<compile_context>
chip_gen: v5e
topology: v5e:2x2
jax: 0.10.0
libtpu: 0.0.40
codegen_flags: <defaults>
</compile_context>

<pallas_src>
import math

import jax
import jax.numpy as jnp
from jax.experimental import pallas as pl
from jax.experimental.pallas import tpu as pltpu


# -----------------------------------------------------------------------------
# Glue: local environment + neighbor/pair-type indexing (static gathers; no
# clean Pallas hot path -- masked_select of the off-diagonal is a static index
# pattern, done once in XLA).
# -----------------------------------------------------------------------------
def neighbor_index(C: int) -> jnp.ndarray:
    # row i = all j != i, increasing order (matches torch.masked_select order)
    return jnp.array([[j for j in range(C) if j != i] for i in range(C)],
                     dtype=jnp.int32)


def local_environment_jax(coords: jnp.ndarray):
    B, C, _ = coords.shape
    rij = coords[:, :, None, :] - coords[:, None, :, :]          # (B,C,C,3)
    dij = jnp.sqrt(jnp.sum(rij * rij, axis=-1))                  # (B,C,C)
    # NOTE: the i==i diagonal (sqrt(0)) is discarded below; forward is exact.
    # TODO(synk): add an eps/mask before sqrt if this path is ever differentiated.
    nbr = neighbor_index(C)                                      # (C,K)
    rows = jnp.arange(C)[:, None]
    rij_n = rij[:, rows, nbr]                                    # (B,C,K,3)
    dij_n = dij[:, rows, nbr]                                    # (B,C,K)
    dinv = 1.0 / dij_n
    loc_env_r = dinv                                             # (B,C,K)
    loc_env_a = rij_n * (dinv * dinv)[..., None]                 # (B,C,K,3)
    return loc_env_r, loc_env_a


def _round_up(x: int, m: int) -> int:
    return ((x + m - 1) // m) * m


# -----------------------------------------------------------------------------
# Augmented block-diagonal weight packing.
#   layer 0 : input [r*oh, oh] (width 2*n_ch)  ->  W0aug (2*n_ch, n_ch*n0)
#   layer 1 : input [h0_exp, oh]               ->  W1aug (n_ch*n0 + n_ch, n1)
#   layer 2 : input [oh_t*h1 blocks, oh]       ->  W2aug (n_ch*n1 + n_ch, n2p)
# Bias rows are driven by the appended one-hot columns, so the GEMM output is
# already the type-selected pre-activation (and exactly zero for padded rows).
# -----------------------------------------------------------------------------
def _pack_aug_weights(params, n_ch, n0, n1, n2, n2p, dtype):
    w0, b0 = params["w0"], params["b0"]      # (n_ch, n0, 1), (n_ch, n0)
    w1, b1 = params["w1"], params["b1"]      # (n_ch, n1, n0), (n_ch, n1)
    w2, b2 = params["w2"], params["b2"]      # (n_ch, n2, n1), (n_ch, n2)

    W0 = jnp.zeros((2 * n_ch, n_ch * n0), jnp.float32)
    W1 = jnp.zeros((n_ch * n0 + n_ch, n1), jnp.float32)
    W2 = jnp.zeros((n_ch * n1 + n_ch, n2p), jnp.float32)
    for t in range(n_ch):
        W0 = W0.at[t, t * n0:(t + 1) * n0].set(w0[t, :, 0])
        W0 = W0.at[n_ch + t, t * n0:(t + 1) * n0].set(b0[t])
        W1 = W1.at[t * n0:(t + 1) * n0, :].set(w1[t].T)
        W1 = W1.at[n_ch * n0 + t, :].set(b1[t])
        W2 = W2.at[t * n1:(t + 1) * n1, :n2].set(w2[t].T)
        W2 = W2.at[n_ch * n1 + t, :n2].set(b2[t])
    return W0.astype(dtype), W1.astype(dtype), W2.astype(dtype)


# -----------------------------------------------------------------------------
# Pallas kernel: one block of TA atoms (Kp padded neighbors each).
#   soh_ref : (TA*Kp, 2*n_ch)      [r * onehot, onehot]   (zeros on pad rows)
#   a_ref   : (TA, Kp, 3)          loc_env_a              (zeros on pad rows)
#   w0/w1/w2: augmented block-diagonal tables (VMEM-resident, constant maps)
#   o_ref   : (axis, TA, n2p)      lane-dense output slab (n2p = 128-padded)
# -----------------------------------------------------------------------------
def _feature_kernel(soh_ref, a_ref, w0_ref, w1_ref, w2_ref, o_ref):
    axis_neuron, TA, n2p = o_ref.shape
    Kp = a_ref.shape[1]
    ncomp = a_ref.shape[2]
    rows = TA * Kp
    n_ch = soh_ref.shape[-1] // 2
    n0 = w0_ref.shape[-1] // n_ch
    n1 = w1_ref.shape[-1]
    gdt = w1_ref.dtype                       # GEMM operand dtype (f32 or bf16)

    soh = soh_ref[...]                       # (rows, 2*n_ch)  f32
    oh = soh[:, n_ch:]                       # (rows, n_ch)    pair-type one-hot

    # ---- layer 0: bias-folded block-diag GEMM; output already masked by type
    z0 = jnp.dot(soh.astype(gdt), w0_ref[...], preferred_element_type=jnp.float32)
    h0e = jnp.tanh(z0)                       # (rows, n_ch*n0); off-type blocks = tanh(0) = 0

    # selected h0 (exactly one nonzero block per row -> sum == select)
    h0 = h0e[:, 0:n0]
    for t in range(1, n_ch):
        h0 = h0 + h0e[:, t * n0:(t + 1) * n0]

    # ---- layer 1: deep block-diag GEMM (contraction n_ch*n0 + n_ch) ----
    g1 = jnp.concatenate([h0e, oh], axis=-1)
    z1 = jnp.dot(g1.astype(gdt), w1_ref[...], preferred_element_type=jnp.float32)
    h1 = jnp.tanh(z1) + jnp.concatenate([h0, h0], axis=-1)        # (rows, n1)

    # ---- layer 2: expand by type, deep GEMM, already type-selected output ---
    g2 = jnp.concatenate([oh[:, t:t + 1] * h1 for t in range(n_ch)] + [oh],
                         axis=-1)                                  # (rows, n_ch*n1 + n_ch)
    z2 = jnp.dot(g2.astype(gdt), w2_ref[...], preferred_element_type=jnp.float32)
    res_parts = [h1, h1]
    if n2p > 2 * n1:
        res_parts.append(jnp.zeros((rows, n2p - 2 * n1), jnp.float32))
    h2 = jnp.tanh(z2) + jnp.concatenate(res_parts, axis=-1)        # (rows, n2p)

    # ---- per-atom feature contraction, vectorized over the whole block ----
    #   M_a[t, o]   = sum_k A[t,k,a] * h2[t,k,o]
    #   out[f,t,o]  = sum_a M_a[t,f] * M_a[t,o]
    h2_3d = h2.reshape(TA, Kp, n2p)          # layout-preserving (Kp % 8 == 0)
    a3 = a_ref[...]                          # (TA, Kp, 3)
    M = [jnp.sum(a3[:, :, c:c + 1] * h2_3d, axis=1) for c in range(ncomp)]
    for f in range(axis_neuron):
        of = M[0][:, f:f + 1] * M[0]
        for c in range(1, ncomp):
            of = of + M[c][:, f:f + 1] * M[c]
        o_ref[f] = of                        # full (TA, n2p) unmasked store


def feature_pallas(coords, atom_types, params, n_types, neuron=(25, 50, 100),
                   axis_neuron=4, block_atoms=None, gemm_dtype=jnp.float32):
    B, C, _ = coords.shape
    K = C - 1
    n0, n1, n2 = neuron
    n_ch = n_types * n_types
    # TODO(synk): only the default doubling-residual config (n1=2*n0, n2=2*n1)
    # of the torch module is implemented in the kernel.
    assert n1 == 2 * n0 and n2 == 2 * n1, "kernel assumes doubling residual widths"

    n2p = _round_up(n2, 128)                 # lane-dense padded output width
    Kp = _round_up(K, 8)                     # sublane-aligned neighbor count

    loc_env_r, loc_env_a = local_environment_jax(coords)   # (B,C,K), (B,C,K,3)

    # pair-type one-hot (depends only on atom index; broadcast over batch)
    nbr = neighbor_index(C)
    nbr_types = atom_types[nbr]                              # (C,K)
    idx = atom_types[:, None] * n_types + nbr_types          # (C,K)
    oh = jax.nn.one_hot(idx, n_ch, dtype=jnp.float32)        # (C,K,n_ch)
    oh = jnp.broadcast_to(oh[None], (B, C, K, n_ch))

    # ---- flatten (B,C) -> atom axis; pick atom block size TA ----
    BC = B * C
    if block_atoms is None:
        TA = max(8, _round_up(max(1, 1024 // Kp), 8))        # ~1K pair rows/step
    else:
        TA = max(8, _round_up(block_atoms, 8))
    TA = min(TA, _round_up(BC, 8))
    if BC >= 16:                                             # keep grid >= 2 (v7x megacore)
        TA = min(TA, _round_up(max(8, (BC + 1) // 2), 8))
    TA = max(8, TA)
    BC_pad = _round_up(BC, TA)

    # ---- pack inputs: zero-pad K->Kp and atoms->BC_pad (zeros stay inert) ----
    r = loc_env_r.reshape(BC, K)
    a = loc_env_a.reshape(BC, K, 3)
    ohf = oh.reshape(BC, K, n_ch)
    soh = jnp.concatenate([r[..., None] * ohf, ohf], axis=-1)     # (BC,K,2*n_ch)
    soh = jnp.pad(soh, ((0, BC_pad - BC), (0, Kp - K), (0, 0)))
    a = jnp.pad(a, ((0, BC_pad - BC), (0, Kp - K), (0, 0)))
    soh = soh.reshape(BC_pad * Kp, 2 * n_ch)

    # augmented, bias-folded, block-diagonal weight tables (VMEM-resident)
    W0, W1, W2 = _pack_aug_weights(params, n_ch, n0, n1, n2, n2p, gemm_dtype)

    out = pl.pallas_call(
        _feature_kernel,
        out_shape=jax.ShapeDtypeStruct((axis_neuron, BC_pad, n2p), jnp.float32),
        grid=(BC_pad // TA,),
        in_specs=[
            pl.BlockSpec((TA * Kp, 2 * n_ch), lambda i: (i, 0)),      # soh
            pl.BlockSpec((TA, Kp, 3), lambda i: (i, 0, 0)),           # loc_env_a
            pl.BlockSpec((2 * n_ch, n_ch * n0), lambda i: (0, 0)),    # W0aug (resident)
            pl.BlockSpec((n_ch * n0 + n_ch, n1), lambda i: (0, 0)),   # W1aug (resident)
            pl.BlockSpec((n_ch * n1 + n_ch, n2p), lambda i: (0, 0)),  # W2aug (resident)
        ],
        out_specs=pl.BlockSpec((axis_neuron, TA, n2p), lambda i: (0, i, 0)),
        compiler_params=pltpu.CompilerParams(
            dimension_semantics=("parallel",)),
    )(soh, a, W0, W1, W2)

    out = out[:, :BC, :n2]                            # (axis, BC, n2)
    out = jnp.transpose(out, (1, 2, 0))               # (BC, n2, axis)
    return out.reshape(B, C, n2 * axis_neuron)        # torch element order

    # TODO(synk): for n_types > 2, group pair rows by pair type in the wrapper
    # and drive the kernel with per-type offsets (PrefetchScalarGridSpec) to
    # drop the n_types^2 MAC inflation of the block-diagonal formulation.


# -----------------------------------------------------------------------------
# Pure-JAX reference (mirrors the PyTorch forward) for validation.
# -----------------------------------------------------------------------------
def feature_ref_jax(coords, atom_types, params, n_types, neuron=(25, 50, 100),
                    axis_neuron=4):
    B, C, _ = coords.shape
    loc_env_r, loc_env_a = local_environment_jax(coords)
    nbr = neighbor_index(C)
    nbr_types = atom_types[nbr]
    idx = atom_types[:, None] * n_types + nbr_types              # (C,K)

    h = loc_env_r[..., None]                                     # (B,C,K,1)
    layer_defs = [("w0", "b0", False), ("w1", "b1", True), ("w2", "b2", True)]
    for wname, bname, residual in layer_defs:
        wg = params[wname][idx]                                  # (C,K,out,in)
        bg = params[bname][idx]                                  # (C,K,out)
        z = jnp.einsum("bcki,ckoi->bcko", h, wg) + bg
        z = jnp.tanh(z)
        if residual:
            z = z + jnp.concatenate([h, h], axis=-1)
        h = z                                                    # (B,C,K,out)

    G = h[..., :axis_neuron]
    t1 = jnp.einsum("bcka,bckf->bcaf", loc_env_a, G)             # (B,C,3,axis)
    t2 = jnp.einsum("bcka,bcaf->bckf", loc_env_a, t1)            # (B,C,K,axis)
    out = jnp.einsum("bcko,bckf->bcof", h, t2)                   # (B,C,n2,axis)
    return out.reshape(B, C, -1)


# -----------------------------------------------------------------------------
# Deterministic parameter init (Dense.reset_parameters-like bounds).
# -----------------------------------------------------------------------------
def init_params(key, n_types, neuron=(25, 50, 100)):
    n_ch = n_types * n_types
    dims = [(1, neuron[0]), (neuron[0], neuron[1]), (neuron[1], neuron[2])]
    params = {}
    for li, (fin, fout) in enumerate(dims):
        key, kw, kb = jax.random.split(key, 3)
        bound = 1.0 / math.sqrt(fin)
        params[f"w{li}"] = jax.random.uniform(
            kw, (n_ch, fout, fin), jnp.float32, -bound, bound)
        params[f"b{li}"] = jax.random.uniform(
            kb, (n_ch, fout), jnp.float32, -bound, bound)
    return params


if __name__ == "__main__":
    neuron = (25, 50, 100)
    axis_neuron = 4
    n_types = 2

    key = jax.random.PRNGKey(0)
    kc1, kc2, kt2, kp = jax.random.split(key, 4)

    # ---- config 1: tiny (B=2, C=4), exercises K padding (K=3 -> Kp=8) ----
    B1, C1 = 2, 4
    coords1 = jax.random.normal(kc1, (B1, C1, 3), dtype=jnp.float32)
    atom_types1 = jnp.array([0, 1, 0, 1], dtype=jnp.int32)
    params = init_params(kp, n_types, neuron)

    ref1 = feature_ref_jax(coords1, atom_types1, params, n_types, neuron, axis_neuron)
    out1 = jax.block_until_ready(
        feature_pallas(coords1, atom_types1, params, n_types, neuron, axis_neuron))
    assert out1.shape == (B1, C1, neuron[-1] * axis_neuron)
    assert jnp.allclose(out1, ref1, atol=1e-4, rtol=1e-4), (
        f"f32 max abs err {jnp.max(jnp.abs(out1 - ref1))}")

    # bf16 MXU-operand path (f32 accumulation) -- relaxed aggregate tolerance
    out1_bf = jax.block_until_ready(
        feature_pallas(coords1, atom_types1, params, n_types, neuron, axis_neuron,
                       gemm_dtype=jnp.bfloat16))
    rel_bf = jnp.linalg.norm(out1_bf - ref1) / jnp.linalg.norm(ref1)
    assert rel_bf < 3e-2, f"bf16 rel-Fro err {rel_bf}"

    # ---- config 2: larger (B=15, C=9) -> multi-block grid + atom padding ----
    B2, C2 = 15, 9
    coords2 = 1.5 * jax.random.normal(kc2, (B2, C2, 3), dtype=jnp.float32)
    atom_types2 = jax.random.randint(kt2, (C2,), 0, n_types).astype(jnp.int32)

    ref2 = feature_ref_jax(coords2, atom_types2, params, n_types, neuron, axis_neuron)
    out2 = jax.block_until_ready(
        feature_pallas(coords2, atom_types2, params, n_types, neuron, axis_neuron))
    assert out2.shape == (B2, C2, neuron[-1] * axis_neuron)
    rel2 = jnp.linalg.norm(out2 - ref2) / jnp.linalg.norm(ref2)
    assert rel2 < 1e-4, f"f32 rel-Fro err {rel2}"

    print("KERNEL_OK")
</pallas_src>

<mosaic_0001>
module attributes {stable_mosaic.version = 11 : i64} {
  func.func @_feature_kernel(%arg0: i32, %arg1: memref<64x8xf32, #tpu.memory_space<vmem>>, %arg2: memref<8x8x3xf32, #tpu.memory_space<vmem>>, %arg3: memref<8x100xf32, #tpu.memory_space<vmem>>, %arg4: memref<104x50xf32, #tpu.memory_space<vmem>>, %arg5: memref<204x128xf32, #tpu.memory_space<vmem>>, %arg6: memref<4x8x128xf32, #tpu.memory_space<vmem>>) attributes {dimension_semantics = [#tpu.dimension_semantics<parallel>], iteration_bounds = array<i64: 1>, scalar_prefetch = 0 : i64, scratch_operands = 0 : i64, tpu.core_type = #tpu.core_type<tc>, window_params = [{transform_indices = @transform_0, window_bounds = array<i64: 64, 8>}, {transform_indices = @transform_1, window_bounds = array<i64: 8, 8, 3>}, {pipeline_mode = #tpu.pipeline_mode<synchronous>, transform_indices = @transform_2, window_bounds = array<i64: 8, 100>}, {pipeline_mode = #tpu.pipeline_mode<synchronous>, transform_indices = @transform_3, window_bounds = array<i64: 104, 50>}, {pipeline_mode = #tpu.pipeline_mode<synchronous>, transform_indices = @transform_4, window_bounds = array<i64: 204, 128>}, {transform_indices = @transform_5, window_bounds = array<i64: 4, 8, 128>}]} {
    %c0 = arith.constant 0 : index
    %c0_0 = arith.constant 0 : index
    %0 = vector.load %arg1[%c0, %c0_0] : memref<64x8xf32, #tpu.memory_space<vmem>>, vector<64x8xf32>
    %1 = vector.extract_strided_slice %0 {offsets = [0, 4], sizes = [64, 4], strides = [1, 1]} : vector<64x8xf32> to vector<64x4xf32>
    %c0_1 = arith.constant 0 : index
    %c0_2 = arith.constant 0 : index
    %2 = vector.load %arg3[%c0_1, %c0_2] : memref<8x100xf32, #tpu.memory_space<vmem>>, vector<8x100xf32>
    %cst = arith.constant dense<0.000000e+00> : vector<64x100xf32>
    %3 = tpu.matmul %0, %2, %cst {dimension_numbers = #tpu.dot_dimension_numbers<[1], [0], [0], [1], [0, 0, 1, 1], [], []>} : vector<64x8xf32>, vector<8x100xf32>, vector<64x100xf32> -> vector<64x100xf32>
    %4 = math.tanh %3 : vector<64x100xf32>
    %5 = vector.extract_strided_slice %4 {offsets = [0, 0], sizes = [64, 25], strides = [1, 1]} : vector<64x100xf32> to vector<64x25xf32>
    %6 = vector.extract_strided_slice %4 {offsets = [0, 25], sizes = [64, 25], strides = [1, 1]} : vector<64x100xf32> to vector<64x25xf32>
    %7 = arith.addf %5, %6 : vector<64x25xf32>
    %8 = vector.extract_strided_slice %4 {offsets = [0, 50], sizes = [64, 25], strides = [1, 1]} : vector<64x100xf32> to vector<64x25xf32>
    %9 = arith.addf %7, %8 : vector<64x25xf32>
    %10 = vector.extract_strided_slice %4 {offsets = [0, 75], sizes = [64, 25], strides = [1, 1]} : vector<64x100xf32> to vector<64x25xf32>
    %11 = arith.addf %9, %10 : vector<64x25xf32>
    %12 = tpu.concatenate %4, %1 in 1 : vector<64x100xf32>, vector<64x4xf32> -> vector<64x104xf32>
    %c0_3 = arith.constant 0 : index
    %c0_4 = arith.constant 0 : index
    %13 = vector.load %arg4[%c0_3, %c0_4] : memref<104x50xf32, #tpu.memory_space<vmem>>, vector<104x50xf32>
    %cst_5 = arith.constant dense<0.000000e+00> : vector<64x50xf32>
    %14 = tpu.matmul %12, %13, %cst_5 {dimension_numbers = #tpu.dot_dimension_numbers<[1], [0], [0], [1], [0, 0, 1, 1], [], []>} : vector<64x104xf32>, vector<104x50xf32>, vector<64x50xf32> -> vector<64x50xf32>
    %15 = math.tanh %14 : vector<64x50xf32>
    %16 = tpu.concatenate %11, %11 in 1 : vector<64x25xf32>, vector<64x25xf32> -> vector<64x50xf32>
    %17 = arith.addf %15, %16 : vector<64x50xf32>
    %18 = vector.extract_strided_slice %1 {offsets = [0, 0], sizes = [64, 1], strides = [1, 1]} : vector<64x4xf32> to vector<64x1xf32>
    %19 = vector.broadcast %18 : vector<64x1xf32> to vector<64x50xf32>
    %20 = arith.mulf %19, %17 : vector<64x50xf32>
    %21 = vector.extract_strided_slice %1 {offsets = [0, 1], sizes = [64, 1], strides = [1, 1]} : vector<64x4xf32> to vector<64x1xf32>
    %22 = vector.broadcast %21 : vector<64x1xf32> to vector<64x50xf32>
    %23 = arith.mulf %22, %17 : vector<64x50xf32>
    %24 = vector.extract_strided_slice %1 {offsets = [0, 2], sizes = [64, 1], strides = [1, 1]} : vector<64x4xf32> to vector<64x1xf32>
    %25 = vector.broadcast %24 : vector<64x1xf32> to vector<64x50xf32>
    %26 = arith.mulf %25, %17 : vector<64x50xf32>
    %27 = vector.extract_strided_slice %1 {offsets = [0, 3], sizes = [64, 1], strides = [1, 1]} : vector<64x4xf32> to vector<64x1xf32>
    %28 = vector.broadcast %27 : vector<64x1xf32> to vector<64x50xf32>
    %29 = arith.mulf %28, %17 : vector<64x50xf32>
    %30 = tpu.concatenate %20, %23, %26, %29, %1 in 1 : vector<64x50xf32>, vector<64x50xf32>, vector<64x50xf32>, vector<64x50xf32>, vector<64x4xf32> -> vector<64x204xf32>
    %c0_6 = arith.constant 0 : index
    %c0_7 = arith.constant 0 : index
    %31 = vector.load %arg5[%c0_6, %c0_7] : memref<204x128xf32, #tpu.memory_space<vmem>>, vector<204x128xf32>
    %cst_8 = arith.constant dense<0.000000e+00> : vector<64x128xf32>
    %32 = tpu.matmul %30, %31, %cst_8 {dimension_numbers = #tpu.dot_dimension_numbers<[1], [0], [0], [1], [0, 0, 1, 1], [], []>} : vector<64x204xf32>, vector<204x128xf32>, vector<64x128xf32> -> vector<64x128xf32>
    %cst_9 = arith.constant 0.000000e+00 : f32
    %33 = vector.broadcast %cst_9 : f32 to vector<64x28xf32>
    %34 = math.tanh %32 : vector<64x128xf32>
    %35 = tpu.concatenate %17, %17, %33 in 1 : vector<64x50xf32>, vector<64x50xf32>, vector<64x28xf32> -> vector<64x128xf32>
    %36 = arith.addf %34, %35 : vector<64x128xf32>
    %37 = vector.shape_cast %36 : vector<64x128xf32> to vector<8x8x128xf32>
    %c0_10 = arith.constant 0 : index
    %c0_11 = arith.constant 0 : index
    %c0_12 = arith.constant 0 : index
    %38 = vector.load %arg2[%c0_10, %c0_11, %c0_12] : memref<8x8x3xf32, #tpu.memory_space<vmem>>, vector<8x8x3xf32>
    %39 = vector.extract_strided_slice %38 {offsets = [0, 0, 0], sizes = [8, 8, 1], strides = [1, 1, 1]} : vector<8x8x3xf32> to vector<8x8x1xf32>
    %40 = vector.broadcast %39 : vector<8x8x1xf32> to vector<8x8x128xf32>
    %41 = arith.mulf %40, %37 : vector<8x8x128xf32>
    %cst_13 = arith.constant dense<0.000000e+00> : vector<8x128xf32>
    %42 = vector.multi_reduction <add>, %41, %cst_13 [1] : vector<8x8x128xf32> to vector<8x128xf32>
    %43 = vector.extract_strided_slice %38 {offsets = [0, 0, 1], sizes = [8, 8, 1], strides = [1, 1, 1]} : vector<8x8x3xf32> to vector<8x8x1xf32>
    %44 = vector.broadcast %43 : vector<8x8x1xf32> to vector<8x8x128xf32>
    %45 = arith.mulf %44, %37 : vector<8x8x128xf32>
    %cst_14 = arith.constant dense<0.000000e+00> : vector<8x128xf32>
    %46 = vector.multi_reduction <add>, %45, %cst_14 [1] : vector<8x8x128xf32> to vector<8x128xf32>
    %47 = vector.extract_strided_slice %38 {offsets = [0, 0, 2], sizes = [8, 8, 1], strides = [1, 1, 1]} : vector<8x8x3xf32> to vector<8x8x1xf32>
    %48 = vector.broadcast %47 : vector<8x8x1xf32> to vector<8x8x128xf32>
    %49 = arith.mulf %48, %37 : vector<8x8x128xf32>
    %cst_15 = arith.constant dense<0.000000e+00> : vector<8x128xf32>
    %50 = vector.multi_reduction <add>, %49, %cst_15 [1] : vector<8x8x128xf32> to vector<8x128xf32>
    %51 = vector.extract_strided_slice %42 {offsets = [0, 0], sizes = [8, 1], strides = [1, 1]} : vector<8x128xf32> to vector<8x1xf32>
    %52 = vector.broadcast %51 : vector<8x1xf32> to vector<8x128xf32>
    %53 = arith.mulf %52, %42 : vector<8x128xf32>
    %54 = vector.extract_strided_slice %46 {offsets = [0, 0], sizes = [8, 1], strides = [1, 1]} : vector<8x128xf32> to vector<8x1xf32>
    %55 = vector.broadcast %54 : vector<8x1xf32> to vector<8x128xf32>
    %56 = arith.mulf %55, %46 : vector<8x128xf32>
    %57 = arith.addf %53, %56 : vector<8x128xf32>
    %58 = vector.extract_strided_slice %50 {offsets = [0, 0], sizes = [8, 1], strides = [1, 1]} : vector<8x128xf32> to vector<8x1xf32>
    %59 = vector.broadcast %58 : vector<8x1xf32> to vector<8x128xf32>
    %60 = arith.mulf %59, %50 : vector<8x128xf32>
    %61 = arith.addf %57, %60 : vector<8x128xf32>
    %c0_16 = arith.constant 0 : index
    %c0_17 = arith.constant 0 : index
    %c0_18 = arith.constant 0 : index
    %62 = vector.load %arg6[%c0_16, %c0_17, %c0_18] : memref<4x8x128xf32, #tpu.memory_space<vmem>>, vector<1x8x128xf32>
    %63 = vector.shape_cast %62 : vector<1x8x128xf32> to vector<8x128xf32>
    %64 = vector.shape_cast %61 : vector<8x128xf32> to vector<1x8x128xf32>
    tpu.vector_store %arg6[%c0_16, %c0_17, %c0_18], %64 {strides = array<i32>} : memref<4x8x128xf32, #tpu.memory_space<vmem>>, vector<1x8x128xf32>,
    %65 = vector.extract_strided_slice %42 {offsets = [0, 1], sizes = [8, 1], strides = [1, 1]} : vector<8x128xf32> to vector<8x1xf32>
    %66 = vector.broadcast %65 : vector<8x1xf32> to vector<8x128xf32>
    %67 = arith.mulf %66, %42 : vector<8x128xf32>
    %68 = vector.extract_strided_slice %46 {offsets = [0, 1], sizes = [8, 1], strides = [1, 1]} : vector<8x128xf32> to vector<8x1xf32>
    %69 = vector.broadcast %68 : vector<8x1xf32> to vector<8x128xf32>
    %70 = arith.mulf %69, %46 : vector<8x128xf32>
    %71 = arith.addf %67, %70 : vector<8x128xf32>
    %72 = vector.extract_strided_slice %50 {offsets = [0, 1], sizes = [8, 1], strides = [1, 1]} : vector<8x128xf32> to vector<8x1xf32>
    %73 = vector.broadcast %72 : vector<8x1xf32> to vector<8x128xf32>
    %74 = arith.mulf %73, %50 : vector<8x128xf32>
    %75 = arith.addf %71, %74 : vector<8x128xf32>
    %c1 = arith.constant 1 : index
    %c0_19 = arith.constant 0 : index
    %c0_20 = arith.constant 0 : index
    %76 = vector.load %arg6[%c1, %c0_19, %c0_20] : memref<4x8x128xf32, #tpu.memory_space<vmem>>, vector<1x8x128xf32>
    %77 = vector.shape_cast %76 : vector<1x8x128xf32> to vector<8x128xf32>
    %78 = vector.shape_cast %75 : vector<8x128xf32> to vector<1x8x128xf32>
    tpu.vector_store %arg6[%c1, %c0_19, %c0_20], %78 {strides = array<i32>} : memref<4x8x128xf32, #tpu.memory_space<vmem>>, vector<1x8x128xf32>,
    %79 = vector.extract_strided_slice %42 {offsets = [0, 2], sizes = [8, 1], strides = [1, 1]} : vector<8x128xf32> to vector<8x1xf32>
    %80 = vector.broadcast %79 : vector<8x1xf32> to vector<8x128xf32>
    %81 = arith.mulf %80, %42 : vector<8x128xf32>
    %82 = vector.extract_strided_slice %46 {offsets = [0, 2], sizes = [8, 1], strides = [1, 1]} : vector<8x128xf32> to vector<8x1xf32>
    %83 = vector.broadcast %82 : vector<8x1xf32> to vector<8x128xf32>
    %84 = arith.mulf %83, %46 : vector<8x128xf32>
    %85 = arith.addf %81, %84 : vector<8x128xf32>
    %86 = vector.extract_strided_slice %50 {offsets = [0, 2], sizes = [8, 1], strides = [1, 1]} : vector<8x128xf32> to vector<8x1xf32>
    %87 = vector.broadcast %86 : vector<8x1xf32> to vector<8x128xf32>
    %88 = arith.mulf %87, %50 : vector<8x128xf32>
    %89 = arith.addf %85, %88 : vector<8x128xf32>
    %c2 = arith.constant 2 : index
    %c0_21 = arith.constant 0 : index
    %c0_22 = arith.constant 0 : index
    %90 = vector.load %arg6[%c2, %c0_21, %c0_22] : memref<4x8x128xf32, #tpu.memory_space<vmem>>, vector<1x8x128xf32>
    %91 = vector.shape_cast %90 : vector<1x8x128xf32> to vector<8x128xf32>
    %92 = vector.shape_cast %89 : vector<8x128xf32> to vector<1x8x128xf32>
    tpu.vector_store %arg6[%c2, %c0_21, %c0_22], %92 {strides = array<i32>} : memref<4x8x128xf32, #tpu.memory_space<vmem>>, vector<1x8x128xf32>,
    %93 = vector.extract_strided_slice %42 {offsets = [0, 3], sizes = [8, 1], strides = [1, 1]} : vector<8x128xf32> to vector<8x1xf32>
    %94 = vector.broadcast %93 : vector<8x1xf32> to vector<8x128xf32>
    %95 = arith.mulf %94, %42 : vector<8x128xf32>
    %96 = vector.extract_strided_slice %46 {offsets = [0, 3], sizes = [8, 1], strides = [1, 1]} : vector<8x128xf32> to vector<8x1xf32>
    %97 = vector.broadcast %96 : vector<8x1xf32> to vector<8x128xf32>
    %98 = arith.mulf %97, %46 : vector<8x128xf32>
    %99 = arith.addf %95, %98 : vector<8x128xf32>
    %100 = vector.extract_strided_slice %50 {offsets = [0, 3], sizes = [8, 1], strides = [1, 1]} : vector<8x128xf32> to vector<8x1xf32>
    %101 = vector.broadcast %100 : vector<8x1xf32> to vector<8x128xf32>
    %102 = arith.mulf %101, %50 : vector<8x128xf32>
    %103 = arith.addf %99, %102 : vector<8x128xf32>
    %c3 = arith.constant 3 : index
    %c0_23 = arith.constant 0 : index
    %c0_24 = arith.constant 0 : index
    %104 = vector.load %arg6[%c3, %c0_23, %c0_24] : memref<4x8x128xf32, #tpu.memory_space<vmem>>, vector<1x8x128xf32>
    %105 = vector.shape_cast %104 : vector<1x8x128xf32> to vector<8x128xf32>
    %106 = vector.shape_cast %103 : vector<8x128xf32> to vector<1x8x128xf32>
    tpu.vector_store %arg6[%c3, %c0_23, %c0_24], %106 {strides = array<i32>} : memref<4x8x128xf32, #tpu.memory_space<vmem>>, vector<1x8x128xf32>,
    return
  }
  func.func @transform_0(%arg0: i32) -> (i32, i32) {
    %c0_i32 = arith.constant 0 : i32
    %c0_i32_0 = arith.constant 0 : i32
    return %arg0, %c0_i32 : i32, i32
  }
  func.func @transform_1(%arg0: i32) -> (i32, i32, i32) {
    %c0_i32 = arith.constant 0 : i32
    %c0_i32_0 = arith.constant 0 : i32
    %c0_i32_1 = arith.constant 0 : i32
    return %arg0, %c0_i32, %c0_i32_0 : i32, i32, i32
  }
  func.func @transform_2(%arg0: i32) -> (i32, i32) {
    %c0_i32 = arith.constant 0 : i32
    %c0_i32_0 = arith.constant 0 : i32
    %c0_i32_1 = arith.constant 0 : i32
    return %c0_i32, %c0_i32_0 : i32, i32
  }
  func.func @transform_3(%arg0: i32) -> (i32, i32) {
    %c0_i32 = arith.constant 0 : i32
    %c0_i32_0 = arith.constant 0 : i32
    %c0_i32_1 = arith.constant 0 : i32
    return %c0_i32, %c0_i32_0 : i32, i32
  }
  func.func @transform_4(%arg0: i32) -> (i32, i32) {
    %c0_i32 = arith.constant 0 : i32
    %c0_i32_0 = arith.constant 0 : i32
    %c0_i32_1 = arith.constant 0 : i32
    return %c0_i32, %c0_i32_0 : i32, i32
  }
  func.func @transform_5(%arg0: i32) -> (i32, i32, i32) {
    %c0_i32 = arith.constant 0 : i32
    %c0_i32_0 = arith.constant 0 : i32
    %c0_i32_1 = arith.constant 0 : i32
    return %c0_i32, %arg0, %c0_i32_0 : i32, i32, i32
  }
}

</mosaic_0001>

<bundles_post_ra>
// kernel: tpu_custom_call.1
= control target key start
LH: loop header
LB: loop body
LE: loop exit
PB: predicated region body
PF: predicated region fallthrough
CT: control target
= control target key end

     0   :  { %10 = vsyncpa [#allocation3], 0  ;;  %s3338_s0 = inlined_call_operand.vmem [shape: f32[64,8], index: 0, kind: input, shape index: {}]   ;;  %s3339_s1 = inlined_call_operand.vmem [shape: f32[8,8,3], index: 1, kind: input, shape index: {}]   ;;  %s3340_s2 = inlined_call_operand.vmem [shape: f32[8,100], index: 2, kind: input, shape index: {}]   ;;  %s3341_s3 = inlined_call_operand.vmem [shape: f32[104,50], index: 3, kind: input, shape index: {}]   ;;  %s3342_s4 = inlined_call_operand.hbm [shape: f32[204,128], index: 4, kind: input, shape index: {}]   ;;  %s3343_s5 = inlined_call_operand.hbm [shape: f32[4,8,128], index: 5, kind: output, shape index: {}]  }
   0x1   :  { %11 = vsyncpa [#allocation4], 0  ;;  %s24_s20 = sshll.u32 %s3342_s4, 4  ;;  %s2133_s21 = smov [#allocation2]   ;;  %s25_s20 = int_to_ptr.hbm [resolvable:$true] %s24_s20 }
   0x2   :  { %s26_s22 = sshll.u32 %s2133_s21, 4  ;;  %s2134_s23 = smov 128   ;;  %s27_s22 = int_to_ptr.vmem [resolvable:$true] %s26_s22 }
   0x3   :  { %s2135_s24 = smov 8  }
   0x4   :  { %32 = dma.hbm_to_vmem [thread:$0]  %s25_s20, 3328, %s27_s22, [#allocation3], %s2134_s23, %s2134_s23, %s2135_s24  }
   0x5   :  { %2129 = dma.done.wait [#allocation3], 3328  }
   0x6   :  { %2130 = vsyncadd [#allocation3], 4294963968  ;;  %v2136_v0 = vmov 4   ;;  %vm46_vm0 = vcmask 64512   ;;  %v45_v1 = vld [vmem:[%s3340_s2] sm:$0xff]  ;;  %v2201_v3 = vld [vmem:[%s3338_s0 + $0x8] sm:$0xff] }
   0x7   :  { %1917 = vset.pattern.permute.xlu2 %v2136_v0  ;;  %1916 = vset.pattern.permute.xlu1 %v2136_v0  ;;  %v2196_v2 = vld [vmem:[%s3338_s0] sm:$0xff]  ;;  %s2137_s30 = smov 96   ;;  %v2207_v4 = vld [vmem:[%s3338_s0 + $0x10] sm:$0xff]  ;;  %v2221_v6 = vld [vmem:[%s3338_s0 + $0x28] sm:$0xff]  ;;  %v2138_v10 = vmov 5   ;;  %v2139_v11 = vmov 6  }
   0x8   :  { %1918 = vset.pattern.permute.xlu0 %v2136_v0  ;;  %86 = vmatpush.msra.mxu0 %v45_v1  ;;  %v2216_v5 = vld [vmem:[%s3338_s0 + $0x20] sm:$0xff]  ;;  %v2230_v7 = vld [vmem:[%s3338_s0 + $0x18] sm:$0xff]  ;;  %v2241_v9 = vld [vmem:[%s3338_s0 + $0x30] sm:$0xff]  ;;  %v2140_v15 = vmov 7   ;;  %s2141_s9 = smov 68   ;;  %vm248_vm1 = vcmask 818176  }
   0x9   :  { %226 = vrot.lane.b32.xlu1 %v2201_v3, %s2137_s30  ;;  %1854 = vmatmul.msk.f32.vlgmr.msra.gmra.mxu0 %vm46_vm0, %v2196_v2  ;;  %v2236_v8 = vld [vmem:[%s3338_s0 + $0x38] sm:$0xff]  ;;  %v269_v12 = vld [vmem:[%s3341_s3 + $0x60] sm:$0xff]  ;;  %v267_v14 = vld [vmem:[%s3341_s3 + $0x50] sm:$0xff]  ;;  %vm270_vm2 = vcmask 850944   ;;  %s2143_s17 = smov 78   ;;  %s2144_s18 = smov 103  }
   0xa   :  { %228 = vrot.lane.b32.xlu2 %v2207_v4, %s2137_s30  ;;  %224 = vrot.lane.b32.xlu0 %v2196_v2, %s2137_s30  ;;  %v268_v13 = vld [vmem:[%s3341_s3 + $0x58] sm:$0xff]  ;;  %v266_v16 = vld [vmem:[%s3341_s3 + $0x48] sm:$0xff]  ;;  %v3344_v62 = vmov 0   ;;  %vm376_vm3 = vcmask 203776   ;;  %s2149_s10 = smov 50   ;;  %s2150_s11 = smov 22  }
   0xb   :  { %298 = vmatpush.msra.mxu1 %v269_v12  ;;  %v265_v17 = vld [vmem:[%s3341_s3 + $0x40] sm:$0xff]  ;;  %v264_v18 = vld [vmem:[%s3341_s3 + $0x38] sm:$0xff]  ;;  %v263_v19 = vld [vmem:[%s3341_s3 + $0x30] sm:$0xff]  ;;  %s2151_s12 = smov 100   ;;  %vm759_vm4 = vcmask 1043456   ;;  %vm690_vm5 = vcmask 179200  }
   0xc   :  { %v262_v20 = vld [vmem:[%s3341_s3 + $0x28] sm:$0xff]  ;;  %v261_v21 = vld [vmem:[%s3341_s3 + $0x20] sm:$0xff]  ;;  %v260_v23 = vld [vmem:[%s3341_s3 + $0x18] sm:$0xff]  ;;  %vm699_vm6 = vcmask 588800   ;;  %vm734_vm7 = vcmask 621568   ;;  %vm673_vm8 = vcmask 408576  }
   0xd   :  { %299 = vmatpush.msra.mxu1 %v268_v13  ;;  %v259_v24 = vld [vmem:[%s3341_s3 + $0x10] sm:$0xff]  ;;  %v258_v25 = vld [vmem:[%s3341_s3 + $0x8] sm:$0xff]  ;;  %v257_v27 = vld [vmem:[%s3341_s3] sm:$0xff]  ;;  %s2142_s3 = smov 53   ;;  %vm1357_vm9 = vcmask 1041409   ;;  %vm1359_vm10 = vcmask 1042434  }
   0xe   :  { %vm1361_vm11 = vcmask 1043459   ;;  %vm1363_vm12 = vcmask 1044484   ;;  %vm1365_vm13 = vcmask 1045509   ;;  %vm1367_vm14 = vcmask 1046534   ;;  %s2153_s13 = smov [#allocation5]   ;;  %s1841_s0 = sshll.u32 %s3343_s5, 4  ;;  %s1842_s0 = int_to_ptr.hbm [resolvable:$true] %s1841_s0 }
   0xf   :  { %300 = vmatpush.msra.mxu1 %v267_v14  ;;  %vm1369_vm15 = vcmask 1047559   ;;  %s1839_s14 = sshll.u32 %s2153_s13, 4  ;;  %s1840_s14 = int_to_ptr.vmem [resolvable:$true] %s1839_s14 }
  0x11   :  { %232 = vrot.lane.b32.xlu1 %v2216_v5, %s2137_s30  ;;  %1855 = vmatmul.msk.f32.gmra.mxu0 %vm46_vm0, %v2201_v3 }
  0x12   :  { %234 = vrot.lane.b32.xlu2 %v2221_v6, %s2137_s30  ;;  %230 = vrot.lane.b32.xlu0 %v2230_v7, %s2137_s30 }
  0x13   :  { %301 = vmatpush.msra.mxu1 %v266_v16 }
  0x15   :  { %302 = vmatpush.msra.mxu1 %v265_v17 }
  0x17   :  { %303 = vmatpush.msra.mxu1 %v264_v18 }
  0x19   :  { %238 = vrot.lane.b32.xlu1 %v2236_v8, %s2137_s30  ;;  %1856 = vmatmul.msk.f32.gmra.mxu0 %vm46_vm0, %v2207_v4 }
  0x1a   :  { %398 = vperm.xlu2 %1917, %v2201_v3   ;;  %236 = vrot.lane.b32.xlu0 %v2241_v9, %s2137_s30 }
  0x1b   :  { %304 = vmatpush.msra.mxu1 %v263_v19 }
  0x1d   :  { %305 = vmatpush.msra.mxu1 %v262_v20 }
  0x1f   :  { %306 = vmatpush.msra.mxu1 %v261_v21  ;;  %v3346_v21 = vmov 1  }
  0x21   :  { %394 = vperm.xlu1 %1916, %v2196_v2   ;;  %1857 = vmatmul.msk.f32.gmra.mxu0 %vm46_vm0, %v2230_v7 }
  0x22   :  { %410 = vperm.xlu2 %1917, %v2216_v5   ;;  %402 = vperm.xlu0 %1918, %v2207_v4  }
  0x23   :  { %307 = vmatpush.msra.mxu1 %v260_v23 }
  0x25   :  { %308 = vmatpush.msra.mxu1 %v259_v24 }
  0x27   :  { %309 = vmatpush.msra.mxu1 %v258_v25 }
  0x29   :  { %406 = vperm.xlu1 %1916, %v2230_v7   ;;  %1858 = vmatmul.msk.f32.gmra.mxu0 %vm46_vm0, %v2216_v5 }
  0x2a   :  { %418 = vperm.xlu2 %1917, %v2241_v9   ;;  %422 = vperm.xlu0 %1918, %v2236_v8  }
  0x2b   :  { %310 = vmatpush.msra.mxu1 %v257_v27 }
  0x31   :  { %414 = vperm.xlu1 %1916, %v2221_v6   ;;  %1859 = vmatmul.msk.f32.gmra.mxu0 %vm46_vm0, %v2221_v6 }
  0x32   :  { %1920 = vset.pattern.permute.xlu2 %v2138_v10  ;;  %1921 = vset.pattern.permute.xlu0 %v2138_v10 }
  0x33   :  { %438 = vperm.xlu2 %1920, %v2201_v3   ;;  %442 = vperm.xlu0 %1921, %v2207_v4  }
  0x39   :  { %1919 = vset.pattern.permute.xlu1 %v2138_v10  ;;  %1860 = vmatmul.msk.f32.gmra.mxu0 %vm46_vm0, %v2241_v9 }
  0x3a   :  { %434 = vperm.xlu1 %1919, %v2196_v2  }
  0x3b   :  { %450 = vperm.xlu2 %1920, %v2216_v5   ;;  %462 = vperm.xlu0 %1921, %v2236_v8  }
  0x41   :  { %1861 = vmatmul.msk.f32.gmra.mxu0 %vm46_vm0, %v2236_v8 }
  0x42   :  { %446 = vperm.xlu1 %1919, %v2230_v7  }
  0x43   :  { %458 = vperm.xlu2 %1920, %v2241_v9   ;;  %1924 = vset.pattern.permute.xlu0 %v2139_v11 }
  0x44   :  { %482 = vperm.xlu0 %1924, %v2207_v4  }
  0x4a   :  { %454 = vperm.xlu1 %1919, %v2221_v6  }
  0x4b   :  { %1923 = vset.pattern.permute.xlu2 %v2139_v11 }
  0x4c   :  { %478 = vperm.xlu2 %1923, %v2201_v3   ;;  %502 = vperm.xlu0 %1924, %v2236_v8  }
  0x52   :  { %1922 = vset.pattern.permute.xlu1 %v2139_v11 }
  0x53   :  { %474 = vperm.xlu1 %1922, %v2196_v2  }
  0x54   :  { %490 = vperm.xlu2 %1923, %v2216_v5   ;;  %1927 = vset.pattern.permute.xlu0 %v2140_v15 }
  0x55   :  { %522 = vperm.xlu0 %1927, %v2207_v4  }
  0x5b   :  { %486 = vperm.xlu1 %1922, %v2230_v7  }
  0x5c   :  { %498 = vperm.xlu2 %1923, %v2241_v9  }
  0x5d   :  { %542 = vperm.xlu0 %1927, %v2236_v8  }
  0x63   :  { %494 = vperm.xlu1 %1922, %v2221_v6  }
  0x64   :  { %v229_v22 = vpop.permute.xlu2 %228  ;;  %1926 = vset.pattern.permute.xlu2 %v2140_v15 }
  0x65   :  { %518 = vperm.xlu2 %1926, %v2201_v3   ;;  %649 = vrot.lane.b32.xlu0 %v2196_v2, %s2141_s9 }
  0x66   :  { %1932 = vset.pattern.permute.xlu0 %v3346_v21 }
  0x6b   :  { %1925 = vset.pattern.permute.xlu1 %v2140_v15 }
  0x6c   :  { %514 = vperm.xlu1 %1925, %v2196_v2   ;;  %v2323_v26 = vpop.permute.xlu2 %234 }
  0x6d   :  { %530 = vperm.xlu2 %1926, %v2216_v5  }
  0x74   :  { %526 = vperm.xlu1 %1925, %v2230_v7   ;;  %v2330_v28 = vpop.permute.xlu2 %398 }
  0x75   :  { %538 = vperm.xlu2 %1926, %v2241_v9  }
  0x7b   :  { %v227_v29 = vpop.permute.xlu1 %226 }
  0x7c   :  { %534 = vperm.xlu1 %1925, %v2221_v6   ;;  %v2334_v30 = vpop.permute.xlu2 %410  ;;  %v225_v35 = vpop.permute.xlu0 %224 }
  0x7d   :  { %653 = vrot.lane.b32.xlu2 %v2207_v4, %s2141_s9 }
  0x7e   :  { %1929 = vset.pattern.permute.xlu2 %v3344_v62 }
  0x83   :  { %v233_v31 = vpop.permute.xlu1 %232 }
  0x84   :  { %651 = vrot.lane.b32.xlu1 %v2201_v3, %s2141_s9  ;;  %v2340_v32 = vpop.permute.xlu2 %418  ;;  %v231_v43 = vpop.permute.xlu0 %230 }
  0x85   :  { %3350 = vst [vmem:[#allocation8_spill] sm:$0xff] %v2340_v32  ;;  %1928 = vset.pattern.permute.xlu1 %v3344_v62 }
  0x86   :  { %v88_v33 = vpop.f32.mrf.mxu0 }
  0x87   :  { %2033 = vtanh.f32 %v88_v33  ;;  %v2517_v33 = vld [vmem:[%s3339_s1 + $0x38] sm:$0xff] }
  0x8b   :  { %v2342_v34 = vpop.permute.xlu1 %238 }
  0x8c   :  { %v237_v51 = vpop.permute.xlu0 %236 }
  0x8d   :  { %v2344_v36 = vpop.permute.xlu2 %438  ;;  %v2346_v37 = vpop.eup %2033 }
  0x8e   :  { %192 = vrot.lane.b32.xlu1 %v2346_v37, %s2142_s3  ;;  %160 = vrot.lane.b32.xlu2 %v2346_v37, %s2143_s17  ;;  %v91_v38 = vpop.f32.mrf.mxu0  ;;  %v249_v39 = vsel %vm248_vm1, %v2346_v37, %v225_v35  ;;  %v915_v35 = vld [vmem:[%s3339_s1 + $0x30] sm:$0xff] }
  0x8f   :  { %128 = vrot.lane.b32.xlu0 %v2346_v37, %s2144_s18  ;;  %2035 = vtanh.f32 %v91_v38  ;;  %1862 = vmatmul.msk.f32.vlgmr.msra.gmra.mxu1 %vm270_vm2, %v249_v39  ;;  %v912_v38 = vld [vmem:[%s3339_s1 + $0x18] sm:$0xff] }
  0x93   :  { %v2357_v40 = vpop.permute.xlu1 %394 }
  0x94   :  { %v2398_v57 = vpop.permute.xlu0 %402 }
  0x95   :  { %v2359_v41 = vpop.permute.xlu2 %450  ;;  %v2361_v42 = vpop.eup %2035 }
  0x96   :  { %194 = vrot.lane.b32.xlu2 %v2361_v42, %s2142_s3  ;;  %v94_v44 = vpop.f32.mrf.mxu0  ;;  %v250_v45 = vsel %vm248_vm1, %v2361_v42, %v227_v29  ;;  %v909_v29 = vld [vmem:[%s3339_s1] sm:$0xff] }
  0x97   :  { %130 = vrot.lane.b32.xlu0 %v2361_v42, %s2144_s18  ;;  %2037 = vtanh.f32 %v94_v44  ;;  %1863 = vmatmul.msk.f32.gmra.mxu1 %vm270_vm2, %v250_v45  ;;  %v3348_v44 = vmov 2   ;;  %v914_v45 = vld [vmem:[%s3339_s1 + $0x28] sm:$0xff] }
  0x9b   :  { %v2370_v46 = vpop.permute.xlu1 %406 }
  0x9c   :  { %v2417_v0 = vpop.permute.xlu0 %422 }
  0x9d   :  { %v2372_v47 = vpop.eup %2037  ;;  %v2378_v50 = vpop.permute.xlu2 %458  ;;  %3352 = vst [vmem:[#allocation10_spill] sm:$0xff] %v2417_v0 }
  0x9e   :  { %132 = vrot.lane.b32.xlu1 %v2372_v47, %s2144_s18  ;;  %v97_v48 = vpop.f32.mrf.mxu0  ;;  %v251_v49 = vsel %vm248_vm1, %v2372_v47, %v229_v22  ;;  %v910_v22 = vld [vmem:[%s3339_s1 + $0x8] sm:$0xff] }
  0x9f   :  { %162 = vrot.lane.b32.xlu0 %v2361_v42, %s2143_s17  ;;  %2039 = vtanh.f32 %v97_v48  ;;  %1864 = vmatmul.msk.f32.gmra.mxu1 %vm270_vm2, %v251_v49 }
  0xa3   :  { %v2383_v52 = vpop.permute.xlu1 %414 }
  0xa4   :  { %3351 = vst [vmem:[#allocation9_spill] sm:$0xff] %v2383_v52 }
  0xa5   :  { %v2385_v53 = vpop.eup %2039  ;;  %v2439_v11 = vpop.permute.xlu0 %442 }
  0xa6   :  { %164 = vrot.lane.b32.xlu1 %v2372_v47, %s2143_s17  ;;  %166 = vrot.lane.b32.xlu2 %v2385_v53, %s2143_s17  ;;  %v100_v54 = vpop.f32.mrf.mxu0  ;;  %v252_v55 = vsel %vm248_vm1, %v2385_v53, %v231_v43  ;;  %v2396_v56 = vpop.permute.xlu2 %478 }
  0xa7   :  { %196 = vrot.lane.b32.xlu0 %v2372_v47, %s2142_s3  ;;  %2041 = vtanh.f32 %v100_v54  ;;  %1865 = vmatmul.msk.f32.gmra.mxu1 %vm270_vm2, %v252_v55 }
  0xac   :  { %v2400_v58 = vpop.permute.xlu1 %434 }
  0xad   :  { %v2402_v59 = vpop.eup %2041  ;;  %v2463_v17 = vpop.permute.xlu0 %462 }
  0xae   :  { %659 = vrot.lane.b32.xlu2 %v2221_v6, %s2141_s9  ;;  %134 = vrot.lane.b32.xlu1 %v2385_v53, %s2144_s18  ;;  %v103_v60 = vpop.f32.mrf.mxu0  ;;  %v253_v61 = vsel %vm248_vm1, %v2402_v59, %v233_v31  ;;  %v2415_v63 = vpop.permute.xlu2 %490 }
  0xaf   :  { %655 = vrot.lane.b32.xlu0 %v2230_v7, %s2141_s9  ;;  %2043 = vtanh.f32 %v103_v60  ;;  %1866 = vmatmul.msk.f32.gmra.mxu1 %vm270_vm2, %v253_v61 }
  0xb4   :  { %v2419_v1 = vpop.permute.xlu1 %446 }
  0xb5   :  { %v2421_v2 = vpop.eup %2043 }
  0xb6   :  { %198 = vrot.lane.b32.xlu1 %v2385_v53, %s2142_s3  ;;  %136 = vrot.lane.b32.xlu2 %v2402_v59, %s2144_s18  ;;  %v106_v3 = vpop.f32.mrf.mxu0  ;;  %v254_v4 = vsel %vm248_vm1, %v2421_v2, %v2323_v26  ;;  %v2435_v7 = vpop.permute.xlu2 %498  ;;  %v2497_v26 = vld [vmem:[%s3339_s1 + $0x10] sm:$0xff] }
  0xb7   :  { %168 = vrot.lane.b32.xlu0 %v2402_v59, %s2143_s17  ;;  %2045 = vtanh.f32 %v106_v3  ;;  %1867 = vmatmul.msk.f32.gmra.mxu1 %vm270_vm2, %v254_v4  ;;  %v2478_v20 = vpop.permute.xlu0 %482 }
  0xbc   :  { %v2433_v6 = vpop.permute.xlu1 %454 }
  0xbd   :  { %v2437_v10 = vpop.eup %2045 }
  0xbe   :  { %657 = vrot.lane.b32.xlu1 %v2216_v5, %s2141_s9  ;;  %200 = vrot.lane.b32.xlu2 %v2402_v59, %s2142_s3  ;;  %v109_v12 = vpop.f32.mrf.mxu0  ;;  %v255_v13 = vsel %vm248_vm1, %v2437_v10, %v237_v51 }
  0xbf   :  { %202 = vrot.lane.b32.xlu0 %v2421_v2, %s2142_s3  ;;  %2047 = vtanh.f32 %v109_v12  ;;  %1868 = vmatmul.msk.f32.gmra.mxu1 %vm270_vm2, %v255_v13  ;;  %v2458_v5 = vpop.permute.xlu2 %518  ;;  %v2492_v25 = vpop.permute.xlu0 %502 }
  0xc5   :  { %v2450_v14 = vpop.permute.xlu1 %474  ;;  %v2452_v15 = vpop.eup %2047 }
  0xc6   :  { %170 = vrot.lane.b32.xlu1 %v2421_v2, %s2143_s17  ;;  %138 = vrot.lane.b32.xlu2 %v2421_v2, %s2144_s18  ;;  %v256_v16 = vsel %vm248_vm1, %v2452_v15, %v2342_v34 }
  0xc7   :  { %140 = vrot.lane.b32.xlu0 %v2437_v10, %s2144_s18  ;;  %1869 = vmatmul.msk.f32.gmra.mxu1 %vm270_vm2, %v256_v16  ;;  %v2476_v19 = vpop.permute.xlu2 %530 }
  0xcd   :  { %v2468_v18 = vpop.permute.xlu1 %486 }
  0xce   :  { %204 = vrot.lane.b32.xlu1 %v2437_v10, %s2142_s3  ;;  %172 = vrot.lane.b32.xlu2 %v2437_v10, %s2143_s17 }
  0xcf   :  { %174 = vrot.lane.b32.xlu0 %v2452_v15, %s2143_s17  ;;  %v2490_v24 = vpop.permute.xlu2 %538 }
  0xd5   :  { %v2486_v23 = vpop.permute.xlu1 %494 }
  0xd6   :  { %924 = vperm.xlu2 %1929, %v910_v22   ;;  %142 = vrot.lane.b32.xlu1 %v2452_v15, %s2144_s18 }
  0xd7   :  { %661 = vrot.lane.b32.xlu0 %v2241_v9, %s2141_s9  ;;  %v913_v9 = vld [vmem:[%s3339_s1 + $0x20] sm:$0xff]  ;;  %v2512_v31 = vpop.permute.xlu2 %653  ;;  %s2148_s1 = smov 25  }
  0xde   :  { %206 = vrot.lane.b32.xlu2 %v2452_v15, %s2142_s3  ;;  %663 = vrot.lane.b32.xlu1 %v2236_v8, %s2141_s9  ;;  %v2504_v27 = vpop.permute.xlu1 %514  ;;  %v2519_v8 = vpop.permute.xlu0 %522 }
  0xdf   :  { %1022 = vperm.xlu0 %1932, %v2497_v26  }
  0xe6   :  { %939 = vperm.xlu2 %1929, %v913_v9   ;;  %919 = vperm.xlu1 %1928, %v909_v29   ;;  %v2522_v34 = vpop.permute.xlu1 %526  ;;  %v2530_v43 = vpop.permute.xlu0 %542 }
  0xe7   :  { %1042 = vperm.xlu0 %1932, %v2517_v33  }
  0xe8   :  { %v161_v39 = vpop.permute.xlu2 %160 }
  0xee   :  { %949 = vperm.xlu2 %1929, %v915_v35   ;;  %934 = vperm.xlu1 %1928, %v912_v38   ;;  %v2537_v48 = vpop.permute.xlu1 %534  ;;  %v2540_v49 = vpop.permute.xlu0 %649 }
  0xef   :  { %1935 = vset.pattern.permute.xlu0 %v3348_v44 }
  0xf0   :  { %1110 = vperm.xlu0 %1935, %v2497_v26   ;;  %v195_v51 = vpop.permute.xlu2 %194 }
  0xf6   :  { %1931 = vset.pattern.permute.xlu2 %v3346_v21  ;;  %944 = vperm.xlu1 %1928, %v914_v45   ;;  %v2542_v54 = vpop.permute.xlu1 %651 }
  0xf7   :  { %1018 = vperm.xlu2 %1931, %v910_v22  }
  0xfe   :  { %1930 = vset.pattern.permute.xlu1 %v3346_v21 }
  0xff   :  { %1030 = vperm.xlu2 %1931, %v913_v9   ;;  %1014 = vperm.xlu1 %1930, %v909_v29  }
 0x100   :  { %v167_v55 = vpop.permute.xlu2 %166  ;;  %v193_v61 = vpop.permute.xlu1 %192 }
 0x101   :  { %v129_v60 = vpop.permute.xlu0 %128 }
 0x102   :  { %v152_v32 = vadd.f32 %v2346_v37, %v129_v60 }
 0x107   :  { %1038 = vperm.xlu2 %1931, %v915_v35   ;;  %1026 = vperm.xlu1 %1930, %v912_v38  }
 0x108   :  { %v2545_v3 = vpop.permute.xlu2 %659 }
 0x109   :  { %3353 = vst [vmem:[#allocation11_spill] sm:$0xff] %v2545_v3  ;;  %v131_v4 = vpop.permute.xlu0 %130 }
 0x10a   :  { %v153_v12 = vadd.f32 %v2361_v42, %v131_v4  ;;  %v184_v4 = vadd.f32 %v161_v39, %v152_v32 }
 0x10f   :  { %1934 = vset.pattern.permute.xlu2 %v3348_v44  ;;  %1034 = vperm.xlu1 %1930, %v914_v45  }
 0x110   :  { %v133_v13 = vpop.permute.xlu1 %132  ;;  %v137_v16 = vpop.permute.xlu2 %136  ;;  %1106 = vperm.xlu2 %1934, %v910_v22   ;;  %v2556_v22 = vadd.f32 %v193_v61, %v184_v4 }
 0x111   :  { %v163_v62 = vpop.permute.xlu0 %162 }
 0x112   :  { %v185_v21 = vadd.f32 %v163_v62, %v153_v12  ;;  %v154_v62 = vadd.f32 %v2372_v47, %v133_v13 }
 0x114   :  { %v2549_v0 = vadd.f32 %v195_v51, %v185_v21 }
 0x116   :  { %354 = vrot.lane.b32.xlu0 %v2549_v0, %s2148_s1 }
 0x117   :  { %1933 = vset.pattern.permute.xlu1 %v3348_v44 }
 0x118   :  { %v165_v3 = vpop.permute.xlu1 %164  ;;  %v201_v52 = vpop.permute.xlu2 %200  ;;  %1118 = vperm.xlu2 %1934, %v913_v9   ;;  %1102 = vperm.xlu1 %1933, %v909_v29   ;;  %v3354_v9 = vmov 0  }
 0x119   :  { %v197_v42 = vpop.permute.xlu0 %196  ;;  %v186_v60 = vadd.f32 %v165_v3, %v154_v62  ;;  %v156_v3 = vadd.f32 %v2402_v59, %v137_v16 }
 0x11b   :  { %v2563_v12 = vadd.f32 %v197_v42, %v186_v60 }
 0x11e   :  { %1130 = vperm.xlu0 %1935, %v2517_v33  }
 0x120   :  { %v135_v21 = vpop.permute.xlu1 %134  ;;  %v139_v37 = vpop.permute.xlu2 %138  ;;  %352 = vrot.lane.b32.xlu2 %v2556_v22, %s2148_s1  ;;  %1114 = vperm.xlu1 %1933, %v912_v38  }
 0x121   :  { %v2561_v51 = vpop.permute.xlu0 %655  ;;  %v155_v32 = vadd.f32 %v2385_v53, %v135_v21 }
 0x123   :  { %v187_v61 = vadd.f32 %v167_v55, %v155_v32  ;;  %v157_v55 = vadd.f32 %v2421_v2, %v139_v37 }
 0x126   :  { %1936 = vset.pattern.permute.xlu0 %v3354_v9 }
 0x127   :  { %929 = vperm.xlu0 %1936, %v2497_v26  }
 0x128   :  { %v199_v29 = vpop.permute.xlu1 %198  ;;  %v173_v39 = vpop.permute.xlu2 %172  ;;  %1126 = vperm.xlu2 %1934, %v915_v35   ;;  %356 = vrot.lane.b32.xlu1 %v2563_v12, %s2148_s1  ;;  %v3355_v35 = vmov 1  }
 0x129   :  { %v169_v47 = vpop.permute.xlu0 %168  ;;  %v2570_v38 = vadd.f32 %v199_v29, %v187_v61 }
 0x12a   :  { %v188_v53 = vadd.f32 %v169_v47, %v156_v3 }
 0x12c   :  { %v2581_v4 = vadd.f32 %v201_v52, %v188_v53 }
 0x12f   :  { %954 = vperm.xlu0 %1936, %v2517_v33  }
 0x130   :  { %v2574_v13 = vpop.permute.xlu1 %657  ;;  %v2576_v42 = vpop.permute.xlu2 %924  ;;  %358 = vrot.lane.b32.xlu2 %v2570_v38, %s2148_s1  ;;  %1122 = vperm.xlu1 %1933, %v914_v45  }
 0x131   :  { %v203_v26 = vpop.permute.xlu0 %202  ;;  %1958 = vset.pattern.permute.xlu2 %v3355_v35 }
 0x137   :  { %360 = vrot.lane.b32.xlu0 %v2581_v4, %s2148_s1 }
 0x138   :  { %v171_v59 = vpop.permute.xlu1 %170  ;;  %v207_v33 = vpop.permute.xlu2 %206  ;;  %1957 = vset.pattern.permute.xlu1 %v3354_v9 }
 0x139   :  { %v189_v16 = vadd.f32 %v171_v59, %v157_v55  ;;  %v141_v62 = vpop.permute.xlu0 %140 }
 0x13a   :  { %v158_v45 = vadd.f32 %v2437_v10, %v141_v62 }
 0x13b   :  { %v2587_v21 = vadd.f32 %v203_v26, %v189_v16 }
 0x13c   :  { %v190_v52 = vadd.f32 %v173_v39, %v158_v45  ;;  %v312_v45 = vpop.f32.mrf.mxu1 }
 0x13d   :  { %362 = vrot.lane.b32.xlu1 %v2587_v21, %s2148_s1  ;;  %2049 = vtanh.f32 %v312_v45 }
 0x140   :  { %v205_v60 = vpop.permute.xlu1 %204  ;;  %v2592_v32 = vpop.permute.xlu2 %939 }
 0x141   :  { %3356 = vst [vmem:[#allocation12_spill] sm:$0xff] %v2592_v32  ;;  %v2594_v2 = vadd.f32 %v205_v60, %v190_v52  ;;  %v175_v37 = vpop.permute.xlu0 %174 }
 0x143   :  { %364 = vrot.lane.b32.xlu2 %v2594_v2, %s2148_s1 }
 0x148   :  { %v2598_v29 = vpop.permute.xlu2 %949  ;;  %v143_v47 = vpop.permute.xlu1 %142 }
 0x149   :  { %3357 = vst [vmem:[#allocation13_spill] sm:$0xff] %v2598_v29  ;;  %v159_v61 = vadd.f32 %v2452_v15, %v143_v47  ;;  %v2617_v62 = vpop.permute.xlu0 %661  ;;  %v315_v47 = vpop.f32.mrf.mxu1 }
 0x14a   :  { %2051 = vtanh.f32 %v315_v47 }
 0x14b   :  { %v191_v3 = vadd.f32 %v175_v37, %v159_v61 }
 0x14d   :  { %v2601_v10 = vadd.f32 %v207_v33, %v191_v3 }
 0x14f   :  { %366 = vrot.lane.b32.xlu0 %v2601_v10, %s2148_s1 }
 0x150   :  { %v2605_v39 = vpop.permute.xlu1 %663 }
 0x151   :  { %v2607_v53 = vpop.permute.xlu2 %1018  ;;  %v2623_v52 = vpop.permute.xlu0 %1022 }
 0x158   :  { %v2609_v26 = vpop.permute.xlu1 %919 }
 0x159   :  { %v2611_v55 = vpop.permute.xlu2 %1030  ;;  %v2629_v61 = vpop.permute.xlu0 %1042 }
 0x15a   :  { %3358 = vst [vmem:[#allocation14_spill] sm:$0xff] %v2611_v55 }
 0x15b   :  { %3362 = vst [vmem:[#allocation18_spill] sm:$0xff] %v2629_v61  ;;  %v318_v61 = vpop.f32.mrf.mxu1 }
 0x160   :  { %v2613_v59 = vpop.permute.xlu1 %934 }
 0x161   :  { %v2615_v16 = vpop.permute.xlu2 %1038 }
 0x162   :  { %3359 = vst [vmem:[#allocation15_spill] sm:$0xff] %v2615_v16  ;;  %v2050_v16 = vpop.eup %2049  ;;  %v2639_v55 = vpop.permute.xlu0 %1110 }
 0x168   :  { %v2619_v15 = vpop.permute.xlu1 %944 }
 0x169   :  { %3360 = vst [vmem:[#allocation16_spill] sm:$0xff] %v2619_v15 }
 0x16a   :  { %v2621_v33 = vpop.permute.xlu2 %1106 }
 0x171   :  { %v2625_v60 = vpop.permute.xlu1 %1014 }
 0x172   :  { %v2627_v37 = vpop.permute.xlu2 %1118 }
 0x173   :  { %3361 = vst [vmem:[#allocation17_spill] sm:$0xff] %v2627_v37 }
 0x179   :  { %v2631_v3 = vpop.permute.xlu1 %1026 }
 0x17a   :  { %3363 = vst [vmem:[#allocation19_spill] sm:$0xff] %v2631_v3  ;;  %v353_v44 = vpop.permute.xlu2 %352 }
 0x17b   :  { %v377_v29 = vsel %vm376_vm3, %v2556_v22, %v353_v44 }
 0x17c   :  { %v2635_v15 = vadd.f32 %v2050_v16, %v377_v29  ;;  %v2052_v29 = vpop.eup %2051  ;;  %v321_v16 = vpop.f32.mrf.mxu1 }
 0x17d   :  { %2053 = vtanh.f32 %v321_v16 }
 0x17e   :  { %861 = vrot.lane.b32.xlu2 %v2635_v15, %s2149_s10  ;;  %v545_v45 = vmul.f32 %v2504_v27, %v2635_v15  ;;  %v505_v44 = vmul.f32 %v2450_v14, %v2635_v15  ;;  %v465_v14 = vmul.f32 %v2400_v58, %v2635_v15  ;;  %2055 = vtanh.f32 %v318_v61 }
 0x180   :  { %625 = vrot.lane.b32.xlu1 %v545_v45, %s2150_s11 }
 0x181   :  { %v2644_v37 = vpop.permute.xlu1 %1034 }
 0x182   :  { %3364 = vst [vmem:[#allocation20_spill] sm:$0xff] %v2644_v37  ;;  %v2646_v32 = vpop.permute.xlu2 %1126 }
 0x183   :  { %3365 = vst [vmem:[#allocation21_spill] sm:$0xff] %v2646_v32 }
 0x184   :  { %v324_v16 = vpop.f32.mrf.mxu1 }
 0x185   :  { %2057 = vtanh.f32 %v324_v16 }
 0x186   :  { %593 = vrot.lane.b32.xlu2 %v505_v44, %s2151_s12 }
 0x188   :  { %v355_v22 = vpop.permute.xlu0 %354 }
 0x189   :  { %v378_v27 = vsel %vm376_vm3, %v2549_v0, %v355_v22 }
 0x18a   :  { %v2653_v3 = vadd.f32 %v2052_v29, %v378_v27  ;;  %v2655_v45 = vpop.permute.xlu1 %1102  ;;  %v359_v32 = vpop.permute.xlu2 %358 }
 0x18b   :  { %v380_v29 = vsel %vm376_vm3, %v2570_v38, %v359_v32 }
 0x18c   :  { %863 = vrot.lane.b32.xlu0 %v2653_v3, %s2149_s10  ;;  %v546_v47 = vmul.f32 %v2458_v5, %v2653_v3  ;;  %v466_v44 = vmul.f32 %v2344_v36, %v2653_v3  ;;  %v506_v58 = vmul.f32 %v2396_v56, %v2653_v3  ;;  %v2054_v5 = vpop.eup %2053 }
 0x18d   :  { %v2675_v37 = vadd.f32 %v2054_v5, %v380_v29 }
 0x18e   :  { %627 = vrot.lane.b32.xlu2 %v546_v47, %s2150_s11  ;;  %v1937_v0 = vpack.i.bf16 %v466_v44, %v465_v14  ;;  %v2056_v14 = vpop.eup %2055 }
 0x18f   :  { %v468_v44 = vmul.f32 %v2419_v1, %v2675_v37  ;;  %v508_v1 = vmul.f32 %v2468_v18, %v2675_v37 }
 0x190   :  { %v2666_v22 = vpop.permute.xlu0 %1130  ;;  %1938 = vrot.lane.b32.xlu1 %v1937_v0, %s2149_s10 }
 0x192   :  { %v2671_v27 = vpop.permute.xlu1 %1114 }
 0x194   :  { %595 = vrot.lane.b32.xlu0 %v506_v58, %s2151_s12 }
 0x196   :  { %867 = vrot.lane.b32.xlu2 %v2675_v37, %s2149_s10 }
 0x199   :  { %v2680_v36 = vpop.permute.xlu0 %929 }
 0x19a   :  { %v357_v47 = vpop.permute.xlu1 %356 }
 0x19b   :  { %v379_v38 = vsel %vm376_vm3, %v2563_v12, %v357_v47  ;;  %v327_v12 = vpop.f32.mrf.mxu1 }
 0x19c   :  { %v2684_v32 = vadd.f32 %v2056_v14, %v379_v38  ;;  %v2058_v14 = vpop.eup %2057  ;;  %2059 = vtanh.f32 %v327_v12  ;;  %v548_v38 = vmul.f32 %v2522_v34, %v2675_v37 }
 0x19d   :  { %v365_v12 = vpop.permute.xlu2 %364 }
 0x19e   :  { %865 = vrot.lane.b32.xlu1 %v2684_v32, %s2149_s10  ;;  %v547_v56 = vmul.f32 %v2519_v8, %v2684_v32  ;;  %v467_v61 = vmul.f32 %v2439_v11, %v2684_v32  ;;  %v507_v58 = vmul.f32 %v2478_v20, %v2684_v32  ;;  %v723_v8 = vld [vmem:[#allocation2 + $0x78] sm:$0xff]  ;;  %v722_v11 = vld [vmem:[#allocation2 + $0x70] sm:$0xff] }
 0x19f   :  { %763 = vmatpush.msrb.mxu0 %v723_v8  ;;  %1879 = vmatpush.msra.mxu2 %v723_v8 }
 0x1a0   :  { %629 = vrot.lane.b32.xlu0 %v547_v56, %s2150_s11  ;;  %v1942_v0 = vpack.i.bf16 %v468_v44, %v467_v61  ;;  %v721_v56 = vld [vmem:[#allocation2 + $0x68] sm:$0xff]  ;;  %v720_v61 = vld [vmem:[#allocation2 + $0x60] sm:$0xff] }
 0x1a1   :  { %v2695_v29 = vpop.permute.xlu0 %954  ;;  %764 = vmatpush.msrb.mxu0 %v722_v11  ;;  %1880 = vmatpush.msra.mxu2 %v722_v11  ;;  %v383_v11 = vsel %vm376_vm3, %v2594_v2, %v365_v12  ;;  %v718_v2 = vld [vmem:[#allocation2 + $0x50] sm:$0xff] }
 0x1a2   :  { %1943 = vrot.lane.b32.xlu2 %v1942_v0, %s2149_s10  ;;  %v2700_v5 = vpop.permute.xlu1 %1122  ;;  %v2060_v34 = vpop.eup %2059 }
 0x1a3   :  { %v330_v18 = vpop.f32.mrf.mxu1  ;;  %765 = vmatpush.msrb.mxu0 %v721_v56  ;;  %1881 = vmatpush.msra.mxu2 %v721_v56 }
 0x1a4   :  { %2061 = vtanh.f32 %v330_v18  ;;  %v733_v18 = vld [vmem:[#allocation2 + $0xc8] sm:$0xf] }
 0x1a5   :  { %766 = vmatpush.msrb.mxu0 %v720_v61  ;;  %1882 = vmatpush.msra.mxu2 %v720_v61  ;;  %v732_v61 = vld [vmem:[#allocation2 + $0xc0] sm:$0xff] }
 0x1a6   :  { %597 = vrot.lane.b32.xlu1 %v507_v58, %s2151_s12  ;;  %1870 = vmatpush.msk.msra.mxu3 %vm759_vm4, %v733_v18  ;;  %v708_v18 = vld [vmem:[#allocation2] sm:$0xff] }
 0x1a8   :  { %811 = vmatpush.msra.mxu3 %v732_v61 }
 0x1a9   :  { %v361_v47 = vpop.permute.xlu0 %360 }
 0x1aa   :  { %v381_v16 = vsel %vm376_vm3, %v2581_v4, %v361_v47  ;;  %599 = vrot.lane.b32.xlu2 %v508_v1, %s2151_s12 }
 0x1ab   :  { %v2708_v20 = vadd.f32 %v2058_v14, %v381_v16  ;;  %v333_v14 = vpop.f32.mrf.mxu1  ;;  %v717_v16 = vld [vmem:[#allocation2 + $0x48] sm:$0xff] }
 0x1ac   :  { %2063 = vtanh.f32 %v333_v14  ;;  %v727_v14 = vld [vmem:[#allocation2 + $0x98] sm:$0xff] }
 0x1ad   :  { %869 = vrot.lane.b32.xlu0 %v2708_v20, %s2149_s10  ;;  %v549_v0 = vmul.f32 %v2476_v19, %v2708_v20  ;;  %v509_v8 = vmul.f32 %v2415_v63, %v2708_v20  ;;  %v2062_v19 = vpop.eup %2061  ;;  %v469_v63 = vmul.f32 %v2359_v41, %v2708_v20 }
 0x1ae   :  { %631 = vrot.lane.b32.xlu1 %v548_v38, %s2150_s11  ;;  %v2731_v47 = vadd.f32 %v2062_v19, %v383_v11  ;;  %v730_v11 = vld [vmem:[#allocation2 + $0xb0] sm:$0xff]  ;;  %v729_v19 = vld [vmem:[#allocation2 + $0xa8] sm:$0xff] }
 0x1af   :  { %v363_v44 = vpop.permute.xlu1 %362 }
 0x1b0   :  { %v382_v4 = vsel %vm376_vm3, %v2587_v21, %v363_v44  ;;  %v719_v21 = vld [vmem:[#allocation2 + $0x58] sm:$0xff]  ;;  %v511_v41 = vmul.f32 %v2435_v7, %v2731_v47 }
 0x1b1   :  { %v2720_v58 = vadd.f32 %v2060_v34, %v382_v4  ;;  %767 = vmatpush.msrb.mxu0 %v719_v21  ;;  %1883 = vmatpush.msra.mxu2 %v719_v21  ;;  %v715_v4 = vld [vmem:[#allocation2 + $0x38] sm:$0xff]  ;;  %v714_v21 = vld [vmem:[#allocation2 + $0x30] sm:$0xff] }
 0x1b2   :  { %633 = vrot.lane.b32.xlu2 %v549_v0, %s2150_s11  ;;  %v731_v0 = vld [vmem:[#allocation2 + $0xb8] sm:$0xff]  ;;  %v2064_v34 = vpop.eup %2063 }
 0x1b3   :  { %v470_v1 = vmul.f32 %v2433_v6, %v2720_v58  ;;  %768 = vmatpush.msrb.mxu0 %v718_v2  ;;  %1884 = vmatpush.msra.mxu2 %v718_v2  ;;  %v510_v56 = vmul.f32 %v2486_v23, %v2720_v58  ;;  %v716_v6 = vld [vmem:[#allocation2 + $0x40] sm:$0xff]  ;;  %v550_v12 = vmul.f32 %v2537_v48, %v2720_v58 }
 0x1b4   :  { %812 = vmatpush.msra.mxu3 %v731_v0 }
 0x1b5   :  { %601 = vrot.lane.b32.xlu0 %v509_v8, %s2151_s12  ;;  %v1947_v38 = vpack.i.bf16 %v470_v1, %v469_v63  ;;  %769 = vmatpush.msrb.mxu0 %v717_v16  ;;  %v551_v8 = vmul.f32 %v2490_v24, %v2731_v47  ;;  %v728_v1 = vld [vmem:[#allocation2 + $0xa0] sm:$0xff]  ;;  %v713_v24 = vld [vmem:[#allocation2 + $0x28] sm:$0xff]  ;;  %v471_v63 = vmul.f32 %v2378_v50, %v2731_v47 }
 0x1b6   :  { %871 = vrot.lane.b32.xlu1 %v2720_v58, %s2149_s10  ;;  %1885 = vmatpush.msra.mxu2 %v717_v16  ;;  %v725_v16 = vld [vmem:[#allocation2 + $0x88] sm:$0xff]  ;;  %v724_v50 = vld [vmem:[#allocation2 + $0x80] sm:$0xff] }
 0x1b7   :  { %770 = vmatpush.msrb.mxu0 %v716_v6  ;;  %813 = vmatpush.msra.mxu3 %v730_v11 }
 0x1b8   :  { %1886 = vmatpush.msra.mxu2 %v716_v6  ;;  %v709_v6 = vld [vmem:[#allocation2 + $0x8] sm:$0xff] }
 0x1b9   :  { %771 = vmatpush.msrb.mxu0 %v715_v4  ;;  %814 = vmatpush.msra.mxu3 %v729_v19 }
 0x1ba   :  { %873 = vrot.lane.b32.xlu2 %v2731_v47, %s2149_s10  ;;  %1887 = vmatpush.msra.mxu2 %v715_v4 }
 0x1bb   :  { %772 = vmatpush.msrb.mxu0 %v714_v21  ;;  %815 = vmatpush.msra.mxu3 %v728_v1 }
 0x1bc   :  { %1888 = vmatpush.msra.mxu2 %v714_v21 }
 0x1bd   :  { %1948 = vrot.lane.b32.xlu0 %v1947_v38, %s2149_s10  ;;  %773 = vmatpush.msrb.mxu0 %v713_v24 }
 0x1be   :  { %603 = vrot.lane.b32.xlu1 %v510_v56, %s2151_s12  ;;  %1889 = vmatpush.msra.mxu2 %v713_v24  ;;  %v711_v56 = vld [vmem:[#allocation2 + $0x18] sm:$0xff] }
 0x1bf   :  { %816 = vmatpush.msra.mxu3 %v727_v14 }
 0x1c1   :  { %v367_v44 = vpop.permute.xlu0 %366 }
 0x1c2   :  { %v384_v23 = vsel %vm376_vm3, %v2601_v10, %v367_v44  ;;  %605 = vrot.lane.b32.xlu2 %v511_v41, %s2151_s12  ;;  %v710_v41 = vld [vmem:[#allocation2 + $0x10] sm:$0xff] }
 0x1c3   :  { %v2748_v7 = vadd.f32 %v2064_v34, %v384_v23 }
 0x1c5   :  { %635 = vrot.lane.b32.xlu0 %v550_v12, %s2150_s11  ;;  %v552_v10 = vmul.f32 %v2530_v43, %v2748_v7  ;;  %v472_v48 = vmul.f32 %v2463_v17, %v2748_v7  ;;  %v726_v43 = vld [vmem:[#allocation2 + $0x90] sm:$0xff]  ;;  %v712_v17 = vld [vmem:[#allocation2 + $0x20] sm:$0xff]  ;;  %v512_v38 = vmul.f32 %v2492_v25, %v2748_v7 }
 0x1c6   :  { %637 = vrot.lane.b32.xlu1 %v551_v8, %s2150_s11  ;;  %817 = vmatpush.msra.mxu3 %v726_v43 }
 0x1c7   :  { %v1952_v2 = vpack.i.bf16 %v472_v48, %v471_v63  ;;  %774 = vmatpush.msrb.mxu0 %v712_v17  ;;  %1890 = vmatpush.msra.mxu2 %v712_v17  ;;  %v426_v48 = vmul.f32 %v2330_v28, %v2653_v3  ;;  %v427_v17 = vmul.f32 %v2398_v57, %v2684_v32 }
 0x1c8   :  { %818 = vmatpush.msra.mxu3 %v725_v16 }
 0x1c9   :  { %775 = vmatpush.msrb.mxu0 %v711_v56  ;;  %1891 = vmatpush.msra.mxu2 %v711_v56 }
 0x1ca   :  { %639 = vrot.lane.b32.xlu2 %v552_v10, %s2150_s11  ;;  %819 = vmatpush.msra.mxu3 %v724_v50  ;;  %v425_v10 = vmul.f32 %v2357_v40, %v2635_v15 }
 0x1cb   :  { %776 = vmatpush.msrb.mxu0 %v710_v41  ;;  %1892 = vmatpush.msra.mxu2 %v710_v41 }
 0x1cd   :  { %875 = vrot.lane.b32.xlu0 %v2748_v7, %s2149_s10  ;;  %777 = vmatpush.msrb.mxu0 %v709_v6 }
 0x1ce   :  { %1953 = vrot.lane.b32.xlu1 %v1952_v2, %s2149_s10  ;;  %1893 = vmatpush.msra.mxu2 %v709_v6 }
 0x1cf   :  { %778 = vmatpush.msrb.mxu0 %v708_v18 }
 0x1d0   :  { %1894 = vmatpush.msra.mxu2 %v708_v18 }
 0x1d5   :  { %607 = vrot.lane.b32.xlu0 %v512_v38, %s2151_s12 }
 0x1d8   :  { %v2767_v25 = vpop.permute.xlu2 %861 }
 0x1e0   :  { %v594_v61 = vpop.permute.xlu2 %593 }
 0x1e8   :  { %v628_v34 = vpop.permute.xlu2 %627 }
 0x1f0   :  { %v2786_v14 = vpop.permute.xlu2 %867 }
 0x1f2   :  { %v626_v44 = vpop.permute.xlu1 %625 }
 0x1f3   :  { %v691_v4 = vsel %vm690_vm5, %v594_v61, %v626_v44 }
 0x1f4   :  { %v700_v23 = vsel %vm699_vm6, %v691_v4, %v2540_v49 }
 0x1f5   :  { %1871 = vmatmul.msk.f32.vlgmr.msra.gmra.mxu3 %vm734_vm7, %v700_v23 }
 0x1fc   :  { %v1944_v2 = vpop.permute.xlu2 %1943 }
 0x1fd   :  { %v1945_v43 = vunpack.i.l.bf16 %v1944_v2  ;;  %v1946_v6 = vunpack.i.h.bf16 %v1944_v2 }
 0x1fe   :  { %v2773_v0 = vpop.permute.xlu0 %863 }
 0x1ff   :  { %v676_v50 = vsel %vm673_vm8, %v427_v17, %v1945_v43 }
 0x202   :  { %v1939_v12 = vpop.permute.xlu1 %1938 }
 0x203   :  { %v1941_v8 = vunpack.i.h.bf16 %v1939_v12  ;;  %v1940_v11 = vunpack.i.l.bf16 %v1939_v12 }
 0x204   :  { %v600_v18 = vpop.permute.xlu2 %599 }
 0x205   :  { %v674_v21 = vsel %vm673_vm8, %v425_v10, %v1940_v11  ;;  %v675_v19 = vsel %vm673_vm8, %v426_v48, %v1941_v8 }
 0x206   :  { %v596_v49 = vpop.permute.xlu0 %595  ;;  %v682_v1 = vsel %vm248_vm1, %v674_v21, %v594_v61  ;;  %v428_v61 = vmul.f32 %v2370_v46, %v2675_v37 }
 0x207   :  { %v692_v24 = vsel %vm690_vm5, %v596_v49, %v628_v34  ;;  %779 = vmatmul.f32.vlgmr.msrb.gmra.mxu0 %v682_v1  ;;  %v683_v63 = vsel %vm248_vm1, %v675_v19, %v596_v49  ;;  %v429_v49 = vmul.f32 %v2334_v30, %v2708_v20 }
 0x208   :  { %782 = vmatmul.f32.vlgmr.msra.gmra.mxu2 %v683_v63  ;;  %v701_v40 = vsel %vm699_vm6, %v692_v24, %v2542_v54  ;;  %v677_v4 = vsel %vm673_vm8, %v428_v61, %v1946_v6 }
 0x209   :  { %1872 = vmatmul.msk.f32.gmra.mxu3 %vm734_vm7, %v701_v40  ;;  %v685_v34 = vsel %vm248_vm1, %v677_v4, %v600_v18  ;;  %v3366_v40 = vld [vmem:[#allocation9_spill] sm:$0xff] }
 0x20a   :  { %v430_v2 = vmul.f32 %v3366_v40, %v2720_v58 }
 0x20c   :  { %v634_v12 = vpop.permute.xlu2 %633 }
 0x210   :  { %v2789_v28 = vpop.permute.xlu1 %865 }
 0x212   :  { %v630_v16 = vpop.permute.xlu0 %629 }
 0x214   :  { %v2818_v1 = vpop.permute.xlu2 %873 }
 0x218   :  { %v598_v38 = vpop.permute.xlu1 %597 }
 0x219   :  { %v693_v56 = vsel %vm690_vm5, %v598_v38, %v630_v16  ;;  %v684_v41 = vsel %vm248_vm1, %v676_v50, %v598_v38  ;;  %v3367_v38 = vld [vmem:[#allocation11_spill] sm:$0xff] }
 0x21a   :  { %785 = vmatmul.f32.gmra.mxu2 %v684_v41  ;;  %v702_v54 = vsel %vm699_vm6, %v693_v56, %v2512_v31 }
 0x21b   :  { %1873 = vmatmul.msk.f32.gmra.mxu3 %vm734_vm7, %v702_v54 }
 0x21c   :  { %v606_v56 = vpop.permute.xlu2 %605 }
 0x21f   :  { %v2801_v57 = vpop.permute.xlu0 %869 }
 0x220   :  { %v632_v44 = vpop.permute.xlu1 %631 }
 0x221   :  { %v694_v23 = vsel %vm690_vm5, %v600_v18, %v632_v44  ;;  %v3368_v44 = vld [vmem:[#allocation8_spill] sm:$0xff] }
 0x222   :  { %788 = vmatmul.f32.gmra.mxu2 %v685_v34  ;;  %v703_v31 = vsel %vm699_vm6, %v694_v23, %v2561_v51  ;;  %v431_v4 = vmul.f32 %v3368_v44, %v2731_v47  ;;  %v886_v44 = vsel %vm673_vm8, %v2653_v3, %v2773_v0 }
 0x223   :  { %1874 = vmatmul.msk.f32.gmra.mxu3 %vm734_vm7, %v703_v31 }
 0x224   :  { %v640_v31 = vpop.permute.xlu2 %639 }
 0x227   :  { %v602_v8 = vpop.permute.xlu0 %601 }
 0x228   :  { %v695_v11 = vsel %vm690_vm5, %v602_v8, %v634_v12  ;;  %v2810_v46 = vpop.permute.xlu1 %871 }
 0x229   :  { %v704_v10 = vsel %vm699_vm6, %v695_v11, %v2574_v13 }
 0x22b   :  { %1875 = vmatmul.msk.f32.gmra.mxu3 %vm734_vm7, %v704_v10 }
 0x22f   :  { %v1949_v48 = vpop.permute.xlu0 %1948 }
 0x230   :  { %v1950_v21 = vunpack.i.l.bf16 %v1949_v48  ;;  %v604_v19 = vpop.permute.xlu1 %603  ;;  %v1951_v63 = vunpack.i.h.bf16 %v1949_v48 }
 0x232   :  { %v678_v51 = vsel %vm673_vm8, %v429_v49, %v1950_v21  ;;  %v679_v16 = vsel %vm673_vm8, %v430_v2, %v1951_v63  ;;  %v885_v63 = vsel %vm673_vm8, %v2635_v15, %v2767_v25 }
 0x233   :  { %v686_v24 = vsel %vm248_vm1, %v678_v51, %v602_v8  ;;  %v687_v50 = vsel %vm248_vm1, %v679_v16, %v604_v19 }
 0x234   :  { %791 = vmatmul.f32.gmra.mxu2 %v686_v24 }
 0x237   :  { %v636_v13 = vpop.permute.xlu0 %635 }
 0x238   :  { %v696_v43 = vsel %vm690_vm5, %v604_v19, %v636_v13  ;;  %v638_v17 = vpop.permute.xlu1 %637  ;;  %v893_v13 = vsel %vm248_vm1, %v885_v63, 0.0 }
 0x239   :  { %v705_v30 = vsel %vm699_vm6, %v696_v43, %v3367_v38  ;;  %v697_v41 = vsel %vm690_vm5, %v606_v56, %v638_v17 }
 0x23a   :  { %1876 = vmatmul.msk.f32.gmra.mxu3 %vm734_vm7, %v705_v30  ;;  %v706_v61 = vsel %vm699_vm6, %v697_v41, %v2617_v62  ;;  %v3369_v62 = vld [vmem:[#allocation10_spill] sm:$0xff] }
 0x23b   :  { %v432_v48 = vmul.f32 %v3369_v62, %v2748_v7 }
 0x23c   :  { %794 = vmatmul.f32.gmra.mxu2 %v687_v50 }
 0x23f   :  { %v2830_v54 = vpop.permute.xlu0 %875 }
 0x240   :  { %v1954_v6 = vpop.permute.xlu1 %1953 }
 0x241   :  { %v1955_v18 = vunpack.i.l.bf16 %v1954_v6  ;;  %v1956_v12 = vunpack.i.h.bf16 %v1954_v6 }
 0x242   :  { %1877 = vmatmul.msk.f32.gmra.mxu3 %vm734_vm7, %v706_v61 }
 0x243   :  { %v680_v23 = vsel %vm673_vm8, %v431_v4, %v1955_v18  ;;  %v681_v21 = vsel %vm673_vm8, %v432_v48, %v1956_v12 }
 0x244   :  { %v688_v34 = vsel %vm248_vm1, %v680_v23, %v606_v56 }
 0x245   :  { %797 = vmatmul.f32.gmra.mxu2 %v688_v34 }
 0x247   :  { %v608_v8 = vpop.permute.xlu0 %607 }
 0x248   :  { %v698_v11 = vsel %vm690_vm5, %v608_v8, %v640_v31  ;;  %v689_v19 = vsel %vm248_vm1, %v681_v21, %v608_v8  ;;  %v3370_v21 = vmov 2  }
 0x249   :  { %v707_v10 = vsel %vm699_vm6, %v698_v11, %v2605_v39 }
 0x24a   :  { %1878 = vmatmul.msk.f32.gmra.mxu3 %vm734_vm7, %v707_v10 }
 0x24d   :  { %800 = vmatmul.f32.gmra.mxu2 %v689_v19 }
 0x278   :  { %v821_v49 = vpop.f32.mrf.mxu3 }
 0x284   :  { %v780_v51 = vpop.f32.mrf.mxu0 }
 0x285   :  { %v822_v24 = vadd.f32 %v821_v49, %v780_v51 }
 0x287   :  { %2065 = vtanh.f32 %v822_v24 }
 0x28b   :  { %v783_v40 = vpop.f32.mrf.mxu2 }
 0x28c   :  { %v824_v39 = vpop.f32.mrf.mxu3 }
 0x28d   :  { %v2066_v2 = vpop.eup %2065  ;;  %v825_v17 = vadd.f32 %v824_v39, %v783_v40 }
 0x28e   :  { %v901_v43 = vadd.f32 %v2066_v2, %v893_v13 }
 0x28f   :  { %2067 = vtanh.f32 %v825_v17 }
 0x290   :  { %v957_v16 = vmul.f32 %v2609_v26, %v901_v43  ;;  %v1045_v38 = vmul.f32 %v2625_v60, %v901_v43  ;;  %v1133_v30 = vmul.f32 %v2655_v45, %v901_v43  ;;  %v894_v60 = vsel %vm248_vm1, %v886_v44, 0.0 }
 0x292   :  { %v965_v50 = vrot.slane %v957_v16, 4  ;;  %v1053_v56 = vrot.slane %v1045_v38, 4  ;;  %v1141_v41 = vrot.slane %v1133_v30, 4 }
 0x294   :  { %v966_v6 = vadd.f32 %v965_v50, %v957_v16  ;;  %v1054_v18 = vadd.f32 %v1053_v56, %v1045_v38  ;;  %v1142_v15 = vadd.f32 %v1141_v41, %v1133_v30  ;;  %v2152_v50 = vmov 3  }
 0x295   :  { %v2068_v4 = vpop.eup %2067 }
 0x296   :  { %v967_v25 = vrot.slane %v966_v6, 2  ;;  %v1143_v61 = vrot.slane %v1142_v15, 2  ;;  %v1055_v26 = vrot.slane %v1054_v18, 2  ;;  %v902_v12 = vadd.f32 %v2068_v4, %v894_v60 }
 0x298   :  { %v968_v23 = vadd.f32 %v967_v25, %v966_v6  ;;  %v1144_v34 = vadd.f32 %v1143_v61, %v1142_v15  ;;  %v1056_v11 = vadd.f32 %v1055_v26, %v1054_v18  ;;  %v958_v3 = vmul.f32 %v2576_v42, %v902_v12 }
 0x299   :  { %v1046_v49 = vmul.f32 %v2607_v53, %v902_v12  ;;  %v1134_v2 = vmul.f32 %v2621_v33, %v902_v12  ;;  %v887_v33 = vsel %vm673_vm8, %v2684_v32, %v2789_v28 }
 0x29a   :  { %v969_v45 = vrot.slane %v968_v23, 1  ;;  %v1145_v31 = vrot.slane %v1144_v34, 1  ;;  %v1057_v0 = vrot.slane %v1056_v11, 1  ;;  %v971_v62 = vrot.slane %v958_v3, 4 }
 0x29b   :  { %v1059_v24 = vrot.slane %v1046_v49, 4  ;;  %v1147_v17 = vrot.slane %v1134_v2, 4  ;;  %v895_v18 = vsel %vm248_vm1, %v887_v33, 0.0 }
 0x29c   :  { %v2858_v8 = vadd.f32 %v969_v45, %v968_v23  ;;  %v2860_v10 = vadd.f32 %v1145_v31, %v1144_v34  ;;  %v2866_v48 = vadd.f32 %v1057_v0, %v1056_v11  ;;  %v972_v19 = vadd.f32 %v971_v62, %v958_v3 }
 0x29d   :  { %v1060_v63 = vadd.f32 %v1059_v24, %v1046_v49  ;;  %v786_v40 = vpop.f32.mrf.mxu2  ;;  %v1148_v30 = vadd.f32 %v1147_v17, %v1134_v2  ;;  %v888_v2 = vsel %vm673_vm8, %v2675_v37, %v2786_v14 }
 0x29e   :  { %1374 = vperm.xlu2 %1958, %v2858_v8   ;;  %1295 = vperm.xlu0 %1936, %v2860_v10   ;;  %v973_v51 = vrot.slane %v972_v19, 2  ;;  %v827_v39 = vpop.f32.mrf.mxu3 }
 0x29f   :  { %1191 = vperm.xlu1 %1957, %v2858_v8   ;;  %v828_v53 = vadd.f32 %v827_v39, %v786_v40  ;;  %v1061_v43 = vrot.slane %v1060_v63, 2  ;;  %v1149_v6 = vrot.slane %v1148_v30, 2 }
 0x2a0   :  { %v974_v42 = vadd.f32 %v973_v51, %v972_v19 }
 0x2a1   :  { %2069 = vtanh.f32 %v828_v53  ;;  %v1062_v38 = vadd.f32 %v1061_v43, %v1060_v63  ;;  %v1150_v61 = vadd.f32 %v1149_v6, %v1148_v30 }
 0x2a2   :  { %v975_v13 = vrot.slane %v974_v42, 1 }
 0x2a3   :  { %v1063_v56 = vrot.slane %v1062_v38, 1  ;;  %v1151_v32 = vrot.slane %v1150_v61, 1 }
 0x2a4   :  { %v2879_v16 = vadd.f32 %v975_v13, %v974_v42  ;;  %v896_v13 = vsel %vm248_vm1, %v888_v2, 0.0 }
 0x2a5   :  { %v2891_v15 = vadd.f32 %v1063_v56, %v1062_v38  ;;  %v2898_v4 = vadd.f32 %v1151_v32, %v1150_v61  ;;  %v789_v0 = vpop.f32.mrf.mxu2  ;;  %v3371_v56 = vld [vmem:[#allocation19_spill] sm:$0xff] }
 0x2a6   :  { %1414 = vperm.xlu2 %1958, %v2866_v48   ;;  %1960 = vset.pattern.permute.xlu0 %v3370_v21  ;;  %v830_v62 = vpop.f32.mrf.mxu3 }
 0x2a7   :  { %1239 = vperm.xlu1 %1957, %v2866_v48   ;;  %1528 = vperm.xlu0 %1960, %v2858_v8   ;;  %v2070_v41 = vpop.eup %2069  ;;  %v831_v24 = vadd.f32 %v830_v62, %v789_v0 }
 0x2a8   :  { %v903_v25 = vadd.f32 %v2070_v41, %v895_v18 }
 0x2a9   :  { %2071 = vtanh.f32 %v831_v24 }
 0x2aa   :  { %v959_v44 = vmul.f32 %v2680_v36, %v903_v25  ;;  %v1135_v23 = vmul.f32 %v2639_v55, %v903_v25  ;;  %v1047_v34 = vmul.f32 %v2623_v52, %v903_v25 }
 0x2ac   :  { %v977_v28 = vrot.slane %v959_v44, 4  ;;  %v1153_v36 = vrot.slane %v1135_v23, 4  ;;  %v1065_v45 = vrot.slane %v1047_v34, 4 }
 0x2ae   :  { %1961 = vset.pattern.permute.xlu2 %v3370_v21  ;;  %v978_v26 = vadd.f32 %v977_v28, %v959_v44  ;;  %v1154_v31 = vadd.f32 %v1153_v36, %v1135_v23  ;;  %v1066_v11 = vadd.f32 %v1065_v45, %v1047_v34  ;;  %v833_v6 = vpop.f32.mrf.mxu3 }
 0x2af   :  { %1959 = vset.pattern.permute.xlu1 %v3355_v35  ;;  %1616 = vperm.xlu2 %1961, %v2860_v10   ;;  %v2072_v53 = vpop.eup %2071 }
 0x2b0   :  { %1568 = vperm.xlu0 %1960, %v2866_v48   ;;  %1462 = vperm.xlu1 %1959, %v2860_v10   ;;  %v979_v60 = vrot.slane %v978_v26, 2  ;;  %v1155_v55 = vrot.slane %v1154_v31, 2  ;;  %v1067_v3 = vrot.slane %v1066_v11, 2  ;;  %v904_v43 = vadd.f32 %v2072_v53, %v896_v13 }
 0x2b2   :  { %v980_v12 = vadd.f32 %v979_v60, %v978_v26  ;;  %v1156_v19 = vadd.f32 %v1155_v55, %v1154_v31  ;;  %v1068_v51 = vadd.f32 %v1067_v3, %v1066_v11  ;;  %v960_v17 = vmul.f32 %v2613_v59, %v904_v43 }
 0x2b3   :  { %v1136_v37 = vmul.f32 %v2671_v27, %v904_v43  ;;  %v1048_v41 = vmul.f32 %v3371_v56, %v904_v43  ;;  %v889_v26 = vsel %vm673_vm8, %v2708_v20, %v2801_v57 }
 0x2b4   :  { %v981_v52 = vrot.slane %v980_v12, 1  ;;  %v1157_v42 = vrot.slane %v1156_v19, 1  ;;  %v1069_v63 = vrot.slane %v1068_v51, 1  ;;  %v983_v14 = vrot.slane %v960_v17, 4 }
 0x2b5   :  { %v1159_v38 = vrot.slane %v1136_v37, 4  ;;  %v1071_v61 = vrot.slane %v1048_v41, 4  ;;  %v897_v11 = vsel %vm248_vm1, %v889_v26, 0.0 }
 0x2b6   :  { %v2913_v49 = vadd.f32 %v981_v52, %v980_v12  ;;  %v2919_v40 = vadd.f32 %v1157_v42, %v1156_v19  ;;  %v2921_v39 = vadd.f32 %v1069_v63, %v1068_v51  ;;  %v984_v33 = vadd.f32 %v983_v14, %v960_v17  ;;  %v3372_v19 = vld [vmem:[#allocation12_spill] sm:$0xff]  ;;  %v3373_v63 = vld [vmem:[#allocation14_spill] sm:$0xff] }
 0x2b7   :  { %1964 = vset.pattern.permute.xlu2 %v3354_v9  ;;  %v792_v30 = vpop.f32.mrf.mxu2  ;;  %v1160_v59 = vadd.f32 %v1159_v38, %v1136_v37  ;;  %v1072_v28 = vadd.f32 %v1071_v61, %v1048_v41 }
 0x2b8   :  { %1963 = vset.pattern.permute.xlu0 %v2152_v50  ;;  %1962 = vset.pattern.permute.xlu1 %v2152_v50  ;;  %v834_v18 = vadd.f32 %v833_v6, %v792_v30  ;;  %v985_v25 = vrot.slane %v984_v33, 2  ;;  %v890_v6 = vsel %vm673_vm8, %v2720_v58, %v2810_v46 }
 0x2b9   :  { %1196 = vperm.xlu2 %1964, %v2879_v16   ;;  %1770 = vperm.xlu0 %1963, %v2860_v10   ;;  %v1161_v44 = vrot.slane %v1160_v59, 2  ;;  %v1073_v45 = vrot.slane %v1072_v28, 2 }
 0x2ba   :  { %1682 = vperm.xlu1 %1962, %v2858_v8   ;;  %2073 = vtanh.f32 %v834_v18  ;;  %v986_v32 = vadd.f32 %v985_v25, %v984_v33  ;;  %v3374_v33 = vld [vmem:[#allocation17_spill] sm:$0xff]  ;;  %v898_v25 = vsel %vm248_vm1, %v890_v6, 0.0 }
 0x2bb   :  { %v1162_v23 = vadd.f32 %v1161_v44, %v1160_v59  ;;  %v1074_v57 = vadd.f32 %v1073_v45, %v1072_v28 }
 0x2bc   :  { %v987_v60 = vrot.slane %v986_v32, 1 }
 0x2bd   :  { %v1163_v55 = vrot.slane %v1162_v23, 1  ;;  %v836_v24 = vpop.f32.mrf.mxu3  ;;  %v1075_v42 = vrot.slane %v1074_v57, 1 }
 0x2be   :  { %v2958_v20 = vadd.f32 %v987_v60, %v986_v32 }
 0x2bf   :  { %v2960_v0 = vadd.f32 %v1163_v55, %v1162_v23  ;;  %v795_v62 = vpop.f32.mrf.mxu2  ;;  %v2972_v17 = vadd.f32 %v1075_v42, %v1074_v57 }
 0x2c0   :  { %v2074_v34 = vpop.eup %2073  ;;  %v837_v53 = vadd.f32 %v836_v24, %v795_v62 }
 0x2c1   :  { %1244 = vperm.xlu2 %1964, %v2891_v15   ;;  %1966 = vset.pattern.permute.xlu0 %v3355_v35  ;;  %v905_v52 = vadd.f32 %v2074_v34, %v897_v11  ;;  %v3375_v34 = vld [vmem:[#allocation20_spill] sm:$0xff] }
 0x2c2   :  { %1722 = vperm.xlu1 %1962, %v2866_v48   ;;  %1378 = vperm.xlu0 %1966, %v2879_v16   ;;  %2075 = vtanh.f32 %v837_v53 }
 0x2c3   :  { %v961_v51 = vmul.f32 %v3372_v19, %v905_v52  ;;  %v1049_v2 = vmul.f32 %v3373_v63, %v905_v52  ;;  %v1137_v56 = vmul.f32 %v3374_v33, %v905_v52 }
 0x2c5   :  { %v989_v43 = vrot.slane %v961_v51, 4  ;;  %v1077_v37 = vrot.slane %v1049_v2, 4  ;;  %v1165_v44 = vrot.slane %v1137_v56, 4 }
 0x2c7   :  { %v990_v14 = vadd.f32 %v989_v43, %v961_v51  ;;  %v1078_v30 = vadd.f32 %v1077_v37, %v1049_v2  ;;  %v1166_v26 = vadd.f32 %v1165_v44, %v1137_v56 }
 0x2c8   :  { %v2076_v59 = vpop.eup %2075 }
 0x2c9   :  { %1967 = vset.pattern.permute.xlu2 %v3355_v35  ;;  %v991_v18 = vrot.slane %v990_v14, 2  ;;  %v1079_v61 = vrot.slane %v1078_v30, 2  ;;  %v906_v32 = vadd.f32 %v2076_v59, %v898_v25  ;;  %v1167_v19 = vrot.slane %v1166_v26, 2 }
 0x2ca   :  { %1965 = vset.pattern.permute.xlu1 %v3354_v9  ;;  %1466 = vperm.xlu2 %1967, %v2898_v4  }
 0x2cb   :  { %1418 = vperm.xlu0 %1966, %v2891_v15   ;;  %1300 = vperm.xlu1 %1965, %v2898_v4   ;;  %v992_v28 = vadd.f32 %v991_v18, %v990_v14  ;;  %v1080_v23 = vadd.f32 %v1079_v61, %v1078_v30  ;;  %v1168_v53 = vadd.f32 %v1167_v19, %v1166_v26 }
 0x2cc   :  { %v1138_v56 = vmul.f32 %v2700_v5, %v906_v32  ;;  %v798_v5 = vpop.f32.mrf.mxu2 }
 0x2cd   :  { %v1081_v62 = vrot.slane %v1080_v23, 1 }
 0x2ce   :  { %v1171_v44 = vrot.slane %v1138_v56, 4 }
 0x2cf   :  { %v3002_v2 = vadd.f32 %v1081_v62, %v1080_v23 }
 0x2d0   :  { %v1172_v26 = vadd.f32 %v1171_v44, %v1138_v56 }
 0x2d2   :  { %1970 = vset.pattern.permute.xlu2 %v2152_v50 }
 0x2d3   :  { %1969 = vset.pattern.permute.xlu0 %v3370_v21  ;;  %1686 = vperm.xlu2 %1970, %v2879_v16  }
 0x2d4   :  { %1968 = vset.pattern.permute.xlu1 %v3370_v21  ;;  %1620 = vperm.xlu0 %1969, %v2898_v4  }
 0x2d5   :  { %1532 = vperm.xlu1 %1968, %v2879_v16  }
 0x2db   :  { %1726 = vperm.xlu2 %1970, %v2891_v15  }
 0x2dc   :  { %1972 = vset.pattern.permute.xlu0 %v3354_v9 }
 0x2dd   :  { %1572 = vperm.xlu1 %1968, %v2891_v15   ;;  %1201 = vperm.xlu0 %1972, %v2913_v49  }
 0x2e3   :  { %1973 = vset.pattern.permute.xlu2 %v3354_v9 }
 0x2e4   :  { %1305 = vperm.xlu2 %1973, %v2919_v40  }
 0x2e5   :  { %1971 = vset.pattern.permute.xlu1 %v2152_v50  ;;  %1249 = vperm.xlu0 %1972, %v2921_v39  }
 0x2e6   :  { %1774 = vperm.xlu1 %1971, %v2898_v4  }
 0x2ec   :  { %1976 = vset.pattern.permute.xlu2 %v3370_v21 }
 0x2ed   :  { %1975 = vset.pattern.permute.xlu0 %v3355_v35  ;;  %1536 = vperm.xlu2 %1976, %v2913_v49  }
 0x2ee   :  { %1974 = vset.pattern.permute.xlu1 %v3355_v35  ;;  %1470 = vperm.xlu0 %1975, %v2919_v40  }
 0x2ef   :  { %1382 = vperm.xlu1 %1974, %v2913_v49  }
 0x2f5   :  { %1576 = vperm.xlu2 %1976, %v2921_v39  }
 0x2f6   :  { %1978 = vset.pattern.permute.xlu0 %v2152_v50 }
 0x2f7   :  { %1422 = vperm.xlu1 %1974, %v2921_v39   ;;  %1690 = vperm.xlu0 %1978, %v2913_v49  }
 0x2f8   :  { %v1375_v27 = vpop.permute.xlu2 %1374 }
 0x2f9   :  { %v1405_v31 = vmul.f32 %v1375_v27, %v2858_v8 }
 0x2fd   :  { %1979 = vset.pattern.permute.xlu2 %v2152_v50 }
 0x2fe   :  { %1778 = vperm.xlu2 %1979, %v2919_v40  }
 0x2ff   :  { %1977 = vset.pattern.permute.xlu1 %v3370_v21  ;;  %1730 = vperm.xlu0 %1978, %v2921_v39  }
 0x300   :  { %1624 = vperm.xlu1 %1977, %v2919_v40   ;;  %v1415_v36 = vpop.permute.xlu2 %1414 }
 0x301   :  { %v1445_v12 = vmul.f32 %v1415_v36, %v2866_v48  ;;  %v1050_v36 = vmul.f32 %v3375_v34, %v906_v32  ;;  %v839_v34 = vpop.f32.mrf.mxu3 }
 0x303   :  { %v2956_v3 = vadd.f32 %v1445_v12, %v1405_v31  ;;  %v993_v31 = vrot.slane %v992_v28, 1  ;;  %v1083_v51 = vrot.slane %v1050_v36, 4 }
 0x305   :  { %v2999_v63 = vadd.f32 %v993_v31, %v992_v28  ;;  %v1084_v43 = vadd.f32 %v1083_v51, %v1050_v36  ;;  %v1173_v31 = vrot.slane %v1172_v26, 2 }
 0x306   :  { %1982 = vset.pattern.permute.xlu2 %v3355_v35 }
 0x307   :  { %1981 = vset.pattern.permute.xlu0 %v3354_v9  ;;  %1386 = vperm.xlu2 %1982, %v2958_v20   ;;  %v1085_v25 = vrot.slane %v1084_v43, 2 }
 0x308   :  { %1980 = vset.pattern.permute.xlu1 %v3354_v9  ;;  %1310 = vperm.xlu0 %1981, %v2960_v0  }
 0x309   :  { %1206 = vperm.xlu1 %1980, %v2958_v20   ;;  %v2970_v13 = vpop.permute.xlu2 %1616  ;;  %v1086_v23 = vadd.f32 %v1085_v25, %v1084_v43 }
 0x30a   :  { %v1647_v6 = vmul.f32 %v2970_v13, %v2860_v10 }
 0x30f   :  { %1426 = vperm.xlu2 %1982, %v2972_v17  }
 0x310   :  { %1985 = vset.pattern.permute.xlu0 %v3370_v21  ;;  %v1296_v38 = vpop.permute.xlu0 %1295 }
 0x311   :  { %1254 = vperm.xlu1 %1980, %v2972_v17   ;;  %1580 = vperm.xlu0 %1985, %v2972_v17   ;;  %v1192_v41 = vpop.permute.xlu1 %1191  ;;  %v1333_v11 = vmul.f32 %v1296_v38, %v2860_v10 }
 0x312   :  { %v1229_v60 = vmul.f32 %v1192_v41, %v2858_v8 }
 0x313   :  { %v1197_v27 = vpop.permute.xlu2 %1196 }
 0x314   :  { %v1230_v55 = vmul.f32 %v1197_v27, %v2879_v16  ;;  %v1169_v27 = vrot.slane %v1168_v53, 1 }
 0x316   :  { %v3023_v28 = vadd.f32 %v1169_v27, %v1168_v53 }
 0x317   :  { %1986 = vset.pattern.permute.xlu2 %v3370_v21 }
 0x318   :  { %1628 = vperm.xlu2 %1986, %v2960_v0  }
 0x319   :  { %1983 = vset.pattern.permute.xlu1 %v3355_v35  ;;  %1988 = vset.pattern.permute.xlu0 %v2152_v50  ;;  %v1240_v58 = vpop.permute.xlu1 %1239  ;;  %v1529_v46 = vpop.permute.xlu0 %1528 }
 0x31a   :  { %1474 = vperm.xlu1 %1983, %v2960_v0   ;;  %1782 = vperm.xlu0 %1988, %v2960_v0   ;;  %v1277_v45 = vmul.f32 %v1240_v58, %v2866_v48  ;;  %v1559_v38 = vmul.f32 %v1529_v46, %v2858_v8  ;;  %v3376_v58 = vld [vmem:[#allocation16_spill] sm:$0xff] }
 0x31b   :  { %v1245_v12 = vpop.permute.xlu2 %1244  ;;  %v962_v46 = vmul.f32 %v3376_v58, %v906_v32 }
 0x31c   :  { %v1285_v52 = vadd.f32 %v1277_v45, %v1229_v60  ;;  %v1278_v57 = vmul.f32 %v1245_v12, %v2891_v15  ;;  %v840_v60 = vadd.f32 %v839_v34, %v798_v5  ;;  %v1087_v45 = vrot.slane %v1086_v23, 1  ;;  %v3377_v5 = vld [vmem:[#allocation21_spill] sm:$0xff] }
 0x31d   :  { %v995_v12 = vrot.slane %v962_v46, 4 }
 0x31e   :  { %v2995_v24 = vadd.f32 %v1333_v11, %v1285_v52  ;;  %v2997_v42 = vadd.f32 %v1278_v57, %v1230_v55  ;;  %2077 = vtanh.f32 %v840_v60  ;;  %v3032_v11 = vadd.f32 %v1087_v45, %v1086_v23 }
 0x31f   :  { %v1174_v55 = vadd.f32 %v1173_v31, %v1172_v26  ;;  %v996_v57 = vadd.f32 %v995_v12, %v962_v46  ;;  %v801_v12 = vpop.f32.mrf.mxu2 }
 0x320   :  { %1989 = vset.pattern.permute.xlu2 %v3354_v9 }
 0x321   :  { %1211 = vperm.xlu2 %1989, %v2999_v63  }
 0x322   :  { %1984 = vset.pattern.permute.xlu1 %v3370_v21  ;;  %1992 = vset.pattern.permute.xlu0 %v3355_v35  ;;  %v1569_v37 = vpop.permute.xlu0 %1568  ;;  %v1463_v14 = vpop.permute.xlu1 %1462 }
 0x323   :  { %1540 = vperm.xlu1 %1984, %v2958_v20   ;;  %1430 = vperm.xlu0 %1992, %v3002_v2   ;;  %v1599_v30 = vmul.f32 %v1569_v37, %v2866_v48  ;;  %v1493_v33 = vmul.f32 %v1463_v14, %v2860_v10  ;;  %v891_v37 = vsel %vm673_vm8, %v2731_v47, %v2818_v1 }
 0x324   :  { %v3013_v41 = vpop.permute.xlu2 %1466 }
 0x325   :  { %v1607_v59 = vadd.f32 %v1599_v30, %v1559_v38  ;;  %v3018_v18 = vadd.f32 %v1493_v33, %v2956_v3  ;;  %v2078_v30 = vpop.eup %2077  ;;  %v1175_v33 = vrot.slane %v1174_v55, 1 }
 0x327   :  { %v3020_v61 = vadd.f32 %v1647_v6, %v1607_v59  ;;  %v899_v6 = vsel %vm248_vm1, %v891_v37, 0.0  ;;  %v3052_v27 = vadd.f32 %v1175_v33, %v1174_v55 }
 0x328   :  { %v907_v59 = vadd.f32 %v2078_v30, %v899_v6 }
 0x329   :  { %1259 = vperm.xlu2 %1989, %v3002_v2  }
 0x32b   :  { %1987 = vset.pattern.permute.xlu1 %v2152_v50  ;;  %1996 = vset.pattern.permute.xlu0 %v3370_v21  ;;  %v1771_v13 = vpop.permute.xlu0 %1770 }
 0x32c   :  { %1694 = vperm.xlu1 %1987, %v2958_v20   ;;  %1632 = vperm.xlu0 %1996, %v3023_v28   ;;  %v1683_v3 = vpop.permute.xlu1 %1682  ;;  %v1801_v14 = vmul.f32 %v1771_v13, %v2860_v10  ;;  %v1139_v13 = vmul.f32 %v3377_v5, %v907_v59 }
 0x32d   :  { %v1687_v36 = vpop.permute.xlu2 %1686  ;;  %v1713_v62 = vmul.f32 %v1683_v3, %v2858_v8  ;;  %v997_v8 = vrot.slane %v996_v57, 2  ;;  %v1494_v3 = vmul.f32 %v3013_v41, %v2898_v4 }
 0x32e   :  { %v1714_v53 = vmul.f32 %v1687_v36, %v2879_v16  ;;  %v1177_v60 = vrot.slane %v1139_v13, 4 }
 0x32f   :  { %v998_v47 = vadd.f32 %v997_v8, %v996_v57  ;;  %v842_v57 = vpop.f32.mrf.mxu3  ;;  %v3379_v8 = vld [vmem:[#allocation15_spill] sm:$0xff] }
 0x330   :  { %v1051_v6 = vmul.f32 %v3379_v8, %v907_v59 }
 0x331   :  { %1993 = vset.pattern.permute.xlu2 %v3355_v35  ;;  %v999_v46 = vrot.slane %v998_v47, 1 }
 0x332   :  { %1478 = vperm.xlu2 %1993, %v3023_v28  }
 0x333   :  { %v3077_v41 = vadd.f32 %v999_v46, %v998_v47 }
 0x334   :  { %1734 = vperm.xlu1 %1987, %v2972_v17   ;;  %2000 = vset.pattern.permute.xlu0 %v3354_v9  ;;  %v1723_v52 = vpop.permute.xlu1 %1722  ;;  %v1379_v32 = vpop.permute.xlu0 %1378 }
 0x335   :  { %v1753_v19 = vmul.f32 %v1723_v52, %v2866_v48  ;;  %1264 = vperm.xlu0 %2000, %v3032_v11   ;;  %v1727_v51 = vpop.permute.xlu2 %1726  ;;  %v1406_v10 = vmul.f32 %v1379_v32, %v2879_v16  ;;  %v3378_v32 = vld [vmem:[#allocation13_spill] sm:$0xff] }
 0x336   :  { %v1754_v43 = vmul.f32 %v1727_v51, %v2891_v15 }
 0x337   :  { %v1761_v38 = vadd.f32 %v1753_v19, %v1713_v62  ;;  %v843_v62 = vadd.f32 %v842_v57, %v801_v12 }
 0x338   :  { %v3045_v56 = vadd.f32 %v1754_v43, %v1714_v53 }
 0x339   :  { %v3047_v48 = vadd.f32 %v1801_v14, %v1761_v38  ;;  %2079 = vtanh.f32 %v843_v62 }
 0x33a   :  { %1994 = vset.pattern.permute.xlu2 %v3370_v21 }
 0x33b   :  { %1544 = vperm.xlu2 %1994, %v2999_v63  }
 0x33c   :  { %1990 = vset.pattern.permute.xlu1 %v3354_v9 }
 0x33d   :  { %1315 = vperm.xlu1 %1990, %v3023_v28   ;;  %2004 = vset.pattern.permute.xlu0 %v3355_v35  ;;  %v1419_v1 = vpop.permute.xlu0 %1418  ;;  %v1301_v44 = vpop.permute.xlu1 %1300 }
 0x33e   :  { %v1446_v25 = vmul.f32 %v1419_v1, %v2891_v15  ;;  %1482 = vperm.xlu0 %2004, %v3052_v27   ;;  %v3060_v23 = vpop.permute.xlu2 %1305  ;;  %v1334_v26 = vmul.f32 %v1301_v44, %v2898_v4 }
 0x33f   :  { %v2080_v5 = vpop.eup %2079 }
 0x340   :  { %v1454_v58 = vadd.f32 %v1446_v25, %v1406_v10  ;;  %v1342_v34 = vadd.f32 %v1334_v26, %v2997_v42  ;;  %v892_v10 = vsel %vm673_vm8, %v2748_v7, %v2830_v54 }
 0x342   :  { %v1502_v36 = vadd.f32 %v1494_v3, %v1454_v58  ;;  %v3069_v45 = vsel %vm1357_vm9, %v1342_v34, %v2995_v24  ;;  %v1178_v24 = vadd.f32 %v1177_v60, %v1139_v13  ;;  %v1089_v3 = vrot.slane %v1051_v6, 4 }
 0x343   :  { %1997 = vset.pattern.permute.xlu2 %v2152_v50 }
 0x344   :  { %v3074_v31 = vsel %vm1357_vm9, %v1502_v36, %v3018_v18  ;;  %1698 = vperm.xlu2 %1997, %v2999_v63   ;;  %v963_v18 = vmul.f32 %v3378_v32, %v907_v59  ;;  %v1179_v19 = vrot.slane %v1178_v24, 2  ;;  %v900_v59 = vsel %vm248_vm1, %v892_v10, 0.0 }
 0x345   :  { %1991 = vset.pattern.permute.xlu1 %v3355_v35  ;;  %v908_v58 = vadd.f32 %v2080_v5, %v900_v59 }
 0x346   :  { %1390 = vperm.xlu1 %1991, %v2999_v63   ;;  %2005 = vset.pattern.permute.xlu0 %v3370_v21  ;;  %v1621_v42 = vpop.permute.xlu0 %1620  ;;  %v1001_v51 = vrot.slane %v963_v18, 4  ;;  %v1180_v53 = vadd.f32 %v1179_v19, %v1178_v24  ;;  %v1090_v24 = vadd.f32 %v1089_v3, %v1051_v6 }
 0x347   :  { %v1533_v55 = vpop.permute.xlu1 %1532  ;;  %1548 = vperm.xlu0 %2005, %v3077_v41   ;;  %v1537_v52 = vpop.permute.xlu2 %1536  ;;  %v1648_v25 = vmul.f32 %v1621_v42, %v2898_v4 }
 0x348   :  { %v1002_v14 = vadd.f32 %v1001_v51, %v963_v18  ;;  %v1560_v38 = vmul.f32 %v1533_v55, %v2879_v16  ;;  %v1561_v47 = vmul.f32 %v1537_v52, %v2913_v49  ;;  %v1181_v16 = vrot.slane %v1180_v53, 1 }
 0x349   :  { %v964_v55 = vmul.f32 %v2695_v29, %v908_v58  ;;  %v1335_v52 = vmul.f32 %v3060_v23, %v2919_v40  ;;  %v1091_v19 = vrot.slane %v1090_v24, 2 }
 0x34a   :  { %v3107_v54 = vadd.f32 %v1181_v16, %v1180_v53 }
 0x34b   :  { %v1092_v53 = vadd.f32 %v1091_v19, %v1090_v24 }
 0x34c   :  { %1738 = vperm.xlu2 %1997, %v3002_v2  }
 0x34e   :  { %1995 = vset.pattern.permute.xlu1 %v3370_v21 }
 0x34f   :  { %1584 = vperm.xlu1 %1995, %v3002_v2   ;;  %v1573_v43 = vpop.permute.xlu1 %1572  ;;  %2009 = vset.pattern.permute.xlu0 %v2152_v50  ;;  %v1202_v37 = vpop.permute.xlu0 %1201 }
 0x350   :  { %v1600_v30 = vmul.f32 %v1573_v43, %v2891_v15  ;;  %v1577_v33 = vpop.permute.xlu2 %1576  ;;  %1742 = vperm.xlu0 %2009, %v3032_v11   ;;  %v1003_v15 = vrot.slane %v1002_v14, 2  ;;  %v1231_v36 = vmul.f32 %v1202_v37, %v2913_v49 }
 0x351   :  { %v1601_v1 = vmul.f32 %v1577_v33, %v2921_v39 }
 0x352   :  { %v1608_v44 = vadd.f32 %v1600_v30, %v1560_v38  ;;  %v1004_v34 = vadd.f32 %v1003_v15, %v1002_v14  ;;  %v3380_v14 = vld [vmem:[#allocation18_spill] sm:$0xff]  ;;  %v1093_v38 = vrot.slane %v1092_v53, 1 }
 0x353   :  { %v3098_v13 = vadd.f32 %v1601_v1, %v1561_v47 }
 0x354   :  { %v1656_v26 = vadd.f32 %v1648_v25, %v1608_v44  ;;  %2001 = vset.pattern.permute.xlu2 %v3354_v9  ;;  %v1005_v57 = vrot.slane %v1004_v34, 1  ;;  %v3141_v8 = vadd.f32 %v1093_v38, %v1092_v53 }
 0x355   :  { %1320 = vperm.xlu2 %2001, %v3052_v27  }
 0x356   :  { %v3105_v7 = vsel %vm1357_vm9, %v1656_v26, %v3020_v61  ;;  %v3132_v23 = vadd.f32 %v1005_v57, %v1004_v34  ;;  %v1140_v26 = vmul.f32 %v2666_v22, %v908_v58 }
 0x357   :  { %1998 = vset.pattern.permute.xlu1 %v2152_v50  ;;  %v1250_v46 = vpop.permute.xlu0 %1249 }
 0x358   :  { %v1279_v60 = vmul.f32 %v1250_v46, %v2921_v39  ;;  %1786 = vperm.xlu1 %1998, %v3023_v28   ;;  %v1775_v12 = vpop.permute.xlu1 %1774  ;;  %2012 = vset.pattern.permute.xlu0 %v3354_v9  ;;  %v3114_v42 = vpop.permute.xlu2 %1778 }
 0x359   :  { %v1802_v61 = vmul.f32 %v1775_v12, %v2898_v4  ;;  %1325 = vperm.xlu0 %2012, %v3107_v54   ;;  %v1007_v4 = vrot.slane %v964_v55, 4  ;;  %v1183_v12 = vrot.slane %v1140_v26, 4 }
 0x35a   :  { %v1287_v32 = vadd.f32 %v1279_v60, %v1231_v36 }
 0x35b   :  { %v1810_v18 = vadd.f32 %v1802_v61, %v3045_v56  ;;  %v1008_v37 = vadd.f32 %v1007_v4, %v964_v55 }
 0x35c   :  { %v1343_v62 = vadd.f32 %v1335_v52, %v1287_v32 }
 0x35d   :  { %v3124_v51 = vsel %vm1357_vm9, %v1810_v18, %v3047_v48  ;;  %2002 = vset.pattern.permute.xlu2 %v3355_v35  ;;  %v1009_v30 = vrot.slane %v1008_v37, 2 }
 0x35e   :  { %v3129_v29 = vsel %vm1359_vm10, %v1343_v62, %v3069_v45  ;;  %1394 = vperm.xlu2 %2002, %v3077_v41   ;;  %v1052_v45 = vmul.f32 %v3380_v14, %v908_v58  ;;  %v1803_v62 = vmul.f32 %v3114_v42, %v2919_v40 }
 0x35f   :  { %v1010_v1 = vadd.f32 %v1009_v30, %v1008_v37 }
 0x360   :  { %1999 = vset.pattern.permute.xlu1 %v3354_v9  ;;  %v1471_v56 = vpop.permute.xlu0 %1470  ;;  %v1095_v33 = vrot.slane %v1052_v45, 4 }
 0x361   :  { %1216 = vperm.xlu1 %1999, %v3077_v41   ;;  %v1383_v43 = vpop.permute.xlu1 %1382  ;;  %2013 = vset.pattern.permute.xlu0 %v3355_v35  ;;  %v1387_v48 = vpop.permute.xlu2 %1386  ;;  %v1495_v59 = vmul.f32 %v1471_v56, %v2919_v40  ;;  %v1011_v34 = vrot.slane %v1010_v1, 1 }
 0x362   :  { %1398 = vperm.xlu0 %2013, %v3132_v23   ;;  %v1407_v10 = vmul.f32 %v1383_v43, %v2913_v49  ;;  %v1096_v5 = vadd.f32 %v1095_v33, %v1052_v45  ;;  %v1408_v16 = vmul.f32 %v1387_v48, %v2958_v20 }
 0x363   :  { %v3161_v55 = vadd.f32 %v1011_v34, %v1010_v1 }
 0x364   :  { %v1097_v60 = vrot.slane %v1096_v5, 2 }
 0x366   :  { %2006 = vset.pattern.permute.xlu2 %v3370_v21  ;;  %v1098_v18 = vadd.f32 %v1097_v60, %v1096_v5 }
 0x367   :  { %1588 = vperm.xlu2 %2006, %v3032_v11  }
 0x368   :  { %v1099_v4 = vrot.slane %v1098_v18, 1 }
 0x369   :  { %2003 = vset.pattern.permute.xlu1 %v3355_v35  ;;  %v1423_v6 = vpop.permute.xlu1 %1422  ;;  %v1691_v47 = vpop.permute.xlu0 %1690 }
 0x36a   :  { %v1447_v25 = vmul.f32 %v1423_v6, %v2921_v39  ;;  %1434 = vperm.xlu1 %2003, %v3032_v11   ;;  %v1427_v44 = vpop.permute.xlu2 %1426  ;;  %2017 = vset.pattern.permute.xlu0 %v3370_v21  ;;  %v1715_v22 = vmul.f32 %v1691_v47, %v2913_v49 }
 0x36b   :  { %v1448_v15 = vmul.f32 %v1427_v44, %v2972_v17  ;;  %1592 = vperm.xlu0 %2017, %v3141_v8  }
 0x36c   :  { %v1455_v3 = vadd.f32 %v1447_v25, %v1407_v10 }
 0x36d   :  { %v3153_v46 = vadd.f32 %v1448_v15, %v1408_v16 }
 0x36e   :  { %v1503_v36 = vadd.f32 %v1495_v59, %v1455_v3 }
 0x36f   :  { %2010 = vset.pattern.permute.xlu2 %v3354_v9 }
 0x370   :  { %v3158_v24 = vsel %vm1359_vm10, %v1503_v36, %v3074_v31  ;;  %1221 = vperm.xlu2 %2010, %v3132_v23   ;;  %v1184_v31 = vadd.f32 %v1183_v12, %v1140_v26 }
 0x371   :  { %v1731_v61 = vpop.permute.xlu0 %1730 }
 0x372   :  { %v1755_v58 = vmul.f32 %v1731_v61, %v2921_v39  ;;  %2007 = vset.pattern.permute.xlu1 %v3370_v21  ;;  %v1625_v52 = vpop.permute.xlu1 %1624  ;;  %v3166_v32 = vpop.permute.xlu2 %1628  ;;  %v1185_v53 = vrot.slane %v1184_v31, 2 }
 0x373   :  { %v1649_v57 = vmul.f32 %v1625_v52, %v2919_v40  ;;  %1636 = vperm.xlu1 %2007, %v3052_v27   ;;  %2021 = vset.pattern.permute.xlu0 %v3354_v9  ;;  %v3183_v40 = vadd.f32 %v1099_v4, %v1098_v18 }
 0x374   :  { %v1763_v19 = vadd.f32 %v1755_v58, %v1715_v22  ;;  %1226 = vperm.xlu0 %2021, %v3161_v55   ;;  %v1186_v48 = vadd.f32 %v1185_v53, %v1184_v31 }
 0x375   :  { %v1657_v49 = vadd.f32 %v1649_v57, %v3098_v13 }
 0x376   :  { %v1811_v39 = vadd.f32 %v1803_v62, %v1763_v19 }
 0x377   :  { %v1672_v56 = vsel %vm1359_vm10, %v1657_v49, %v3105_v7  ;;  %v1187_v7 = vrot.slane %v1186_v48, 1 }
 0x378   :  { %v3179_v43 = vsel %vm1359_vm10, %v1811_v39, %v3124_v51  ;;  %2014 = vset.pattern.permute.xlu2 %v3355_v35 }
 0x379   :  { %1438 = vperm.xlu2 %2014, %v3141_v8   ;;  %v3191_v14 = vadd.f32 %v1187_v7, %v1186_v48 }
 0x37a   :  { %v1311_v51 = vpop.permute.xlu0 %1310 }
 0x37b   :  { %2008 = vset.pattern.permute.xlu1 %v2152_v50  ;;  %v1207_v42 = vpop.permute.xlu1 %1206  ;;  %v1212_v13 = vpop.permute.xlu2 %1211  ;;  %v1336_v47 = vmul.f32 %v1311_v51, %v2960_v0 }
 0x37c   :  { %1702 = vperm.xlu1 %2008, %v3077_v41   ;;  %2025 = vset.pattern.permute.xlu0 %v3355_v35  ;;  %v1232_v45 = vmul.f32 %v1207_v42, %v2958_v20  ;;  %v1233_v33 = vmul.f32 %v1212_v13, %v2999_v63 }
 0x37d   :  { %1442 = vperm.xlu0 %2025, %v3183_v40  }
 0x381   :  { %2018 = vset.pattern.permute.xlu2 %v3370_v21 }
 0x382   :  { %1640 = vperm.xlu2 %2018, %v3107_v54  }
 0x383   :  { %v1255_v37 = vpop.permute.xlu1 %1254  ;;  %v1260_v30 = vpop.permute.xlu2 %1259 }
 0x384   :  { %v1280_v38 = vmul.f32 %v1255_v37, %v2972_v17  ;;  %2011 = vset.pattern.permute.xlu1 %v3354_v9  ;;  %v1281_v6 = vmul.f32 %v1260_v30, %v3002_v2  ;;  %v1581_v59 = vpop.permute.xlu0 %1580 }
 0x385   :  { %1269 = vperm.xlu1 %2011, %v3141_v8   ;;  %2029 = vset.pattern.permute.xlu0 %v3370_v21  ;;  %v1602_v34 = vmul.f32 %v1581_v59, %v2972_v17 }
 0x386   :  { %v1288_v1 = vadd.f32 %v1280_v38, %v1232_v45  ;;  %1644 = vperm.xlu0 %2029, %v3191_v14   ;;  %v1289_v10 = vadd.f32 %v1281_v6, %v1233_v33 }
 0x388   :  { %v1344_v25 = vadd.f32 %v1336_v47, %v1288_v1 }
 0x38a   :  { %v1362_v44 = vsel %vm1361_vm11, %v1344_v25, %v3129_v29  ;;  %2019 = vset.pattern.permute.xlu2 %v2152_v50 }
 0x38b   :  { %1706 = vperm.xlu2 %2019, %v3132_v23  }
 0x38c   :  { %v1475_v5 = vpop.permute.xlu1 %1474  ;;  %v1479_v15 = vpop.permute.xlu2 %1478 }
 0x38d   :  { %v1496_v16 = vmul.f32 %v1475_v5, %v2960_v0  ;;  %2015 = vset.pattern.permute.xlu1 %v3355_v35  ;;  %v1783_v52 = vpop.permute.xlu0 %1782  ;;  %v1497_v51 = vmul.f32 %v1479_v15, %v3023_v28 }
 0x38e   :  { %1486 = vperm.xlu1 %2015, %v3107_v54   ;;  %2030 = vset.pattern.permute.xlu0 %v2152_v50  ;;  %v1804_v49 = vmul.f32 %v1783_v52, %v2960_v0 }
 0x38f   :  { %v1504_v26 = vadd.f32 %v1496_v16, %v3153_v46  ;;  %1710 = vperm.xlu0 %2030, %v3161_v55   ;;  %v1650_v46 = vmul.f32 %v3166_v32, %v2960_v0 }
 0x391   :  { %v1519_v29 = vsel %vm1361_vm11, %v1504_v26, %v3158_v24 }
 0x393   :  { %2022 = vset.pattern.permute.xlu2 %v3354_v9 }
 0x394   :  { %1274 = vperm.xlu2 %2022, %v3183_v40  }
 0x395   :  { %v1541_v3 = vpop.permute.xlu1 %1540  ;;  %v1545_v60 = vpop.permute.xlu2 %1544 }
 0x396   :  { %v1562_v36 = vmul.f32 %v1541_v3, %v2958_v20  ;;  %2016 = vset.pattern.permute.xlu1 %v3370_v21  ;;  %v1563_v33 = vmul.f32 %v1545_v60, %v2999_v63 }
 0x397   :  { %1552 = vperm.xlu1 %2016, %v3132_v23   ;;  %1794 = vperm.xlu0 %2030, %v3107_v54  }
 0x398   :  { %v1610_v12 = vadd.f32 %v1602_v34, %v1562_v36 }
 0x39a   :  { %v1658_v24 = vadd.f32 %v1650_v46, %v1610_v12 }
 0x39c   :  { %v1673_v61 = vsel %vm1361_vm11, %v1658_v24, %v1672_v56  ;;  %2026 = vset.pattern.permute.xlu2 %v3355_v35 }
 0x39d   :  { %1490 = vperm.xlu2 %2026, %v3191_v14  }
 0x39e   :  { %v1695_v22 = vpop.permute.xlu1 %1694  ;;  %v1699_v58 = vpop.permute.xlu2 %1698 }
 0x39f   :  { %2020 = vset.pattern.permute.xlu1 %v2152_v50  ;;  %v1716_v32 = vmul.f32 %v1695_v22, %v2958_v20  ;;  %v1717_v62 = vmul.f32 %v1699_v58, %v2999_v63  ;;  %v1431_v20 = vpop.permute.xlu0 %1430 }
 0x3a0   :  { %1746 = vperm.xlu1 %2020, %v3141_v8   ;;  %v1449_v13 = vmul.f32 %v1431_v20, %v3002_v2 }
 0x3a5   :  { %2027 = vset.pattern.permute.xlu2 %v3370_v21 }
 0x3a6   :  { %v1735_v18 = vpop.permute.xlu1 %1734  ;;  %1556 = vperm.xlu2 %2027, %v3161_v55   ;;  %v1739_v31 = vpop.permute.xlu2 %1738 }
 0x3a7   :  { %v1756_v57 = vmul.f32 %v1735_v18, %v2972_v17  ;;  %v1757_v19 = vmul.f32 %v1739_v31, %v3002_v2  ;;  %v1633_v48 = vpop.permute.xlu0 %1632 }
 0x3a8   :  { %2023 = vset.pattern.permute.xlu1 %v3354_v9 }
 0x3a9   :  { %v1764_v39 = vadd.f32 %v1756_v57, %v1716_v32  ;;  %1330 = vperm.xlu1 %2023, %v3191_v14   ;;  %v1765_v4 = vadd.f32 %v1757_v19, %v1717_v62 }
 0x3ab   :  { %v1812_v56 = vadd.f32 %v1804_v49, %v1764_v39 }
 0x3ad   :  { %v1827_v53 = vsel %vm1361_vm11, %v1812_v56, %v3179_v43 }
 0x3ae   :  { %2031 = vset.pattern.permute.xlu2 %v2152_v50 }
 0x3af   :  { %v1316_v17 = vpop.permute.xlu1 %1315  ;;  %1750 = vperm.xlu2 %2031, %v3183_v40   ;;  %v1321_v45 = vpop.permute.xlu2 %1320 }
 0x3b0   :  { %v1337_v42 = vmul.f32 %v1316_v17, %v3023_v28  ;;  %v1265_v47 = vpop.permute.xlu0 %1264 }
 0x3b1   :  { %2024 = vset.pattern.permute.xlu1 %v3355_v35 }
 0x3b2   :  { %v1345_v9 = vadd.f32 %v1337_v42, %v1289_v10  ;;  %1402 = vperm.xlu1 %2024, %v3161_v55  }
 0x3b4   :  { %v3245_v0 = vsel %vm1363_vm12, %v1345_v9, %v1362_v44  ;;  %v1282_v9 = vmul.f32 %v1265_v47, %v3032_v11 }
 0x3b7   :  { %1790 = vperm.xlu2 %2031, %v3052_v27  }
 0x3b8   :  { %v1391_v43 = vpop.permute.xlu1 %1390  ;;  %v1395_v25 = vpop.permute.xlu2 %1394 }
 0x3b9   :  { %v1409_v7 = vmul.f32 %v1391_v43, %v2999_v63  ;;  %v3263_v15 = vpop.permute.xlu0 %1482 }
 0x3ba   :  { %2028 = vset.pattern.permute.xlu1 %v3370_v21  ;;  %v1651_v21 = vmul.f32 %v1633_v48, %v3023_v28 }
 0x3bb   :  { %v1457_v37 = vadd.f32 %v1449_v13, %v1409_v7  ;;  %1596 = vperm.xlu1 %2028, %v3183_v40   ;;  %v1338_v7 = vmul.f32 %v1321_v45, %v3052_v27 }
 0x3bd   :  { %v1505_v35 = vadd.f32 %v1497_v51, %v1457_v37 }
 0x3bf   :  { %v3254_v38 = vsel %vm1363_vm12, %v1505_v35, %v1519_v29 }
 0x3c1   :  { %v1585_v30 = vpop.permute.xlu1 %1584  ;;  %v1589_v26 = vpop.permute.xlu2 %1588 }
 0x3c2   :  { %v1603_v6 = vmul.f32 %v1585_v30, %v3002_v2  ;;  %v1549_v29 = vpop.permute.xlu0 %1548  ;;  %v1604_v36 = vmul.f32 %v1589_v26, %v3032_v11 }
 0x3c3   :  { %2032 = vset.pattern.permute.xlu1 %v2152_v50  ;;  %v1564_v60 = vmul.f32 %v1549_v29, %v3077_v41 }
 0x3c4   :  { %v1611_v1 = vadd.f32 %v1603_v6, %v1563_v33  ;;  %1798 = vperm.xlu1 %2032, %v3191_v14  }
 0x3c5   :  { %v1612_v12 = vadd.f32 %v1604_v36, %v1564_v60  ;;  %v1498_v60 = vmul.f32 %v3263_v15, %v3052_v27 }
 0x3c6   :  { %v1659_v10 = vadd.f32 %v1651_v21, %v1611_v1 }
 0x3c8   :  { %v1674_v44 = vsel %vm1363_vm12, %v1659_v10, %v1673_v61 }
 0x3ca   :  { %v1787_v5 = vpop.permute.xlu1 %1786  ;;  %v1222_v59 = vpop.permute.xlu2 %1221 }
 0x3cb   :  { %v1805_v16 = vmul.f32 %v1787_v5, %v3023_v28  ;;  %v3268_v34 = vpop.permute.xlu0 %1742  ;;  %v1235_v43 = vmul.f32 %v1222_v59, %v3132_v23 }
 0x3cd   :  { %v1813_v63 = vadd.f32 %v1805_v16, %v1765_v4  ;;  %v1410_v16 = vmul.f32 %v1395_v25, %v3077_v41 }
 0x3cf   :  { %v3266_v2 = vsel %vm1363_vm12, %v1813_v63, %v1827_v53 }
 0x3d3   :  { %v1217_v50 = vpop.permute.xlu1 %1216  ;;  %v1439_v28 = vpop.permute.xlu2 %1438 }
 0x3d4   :  { %v1326_v58 = vpop.permute.xlu0 %1325  ;;  %v1234_v53 = vmul.f32 %v1217_v50, %v3077_v41  ;;  %v1451_v50 = vmul.f32 %v1439_v28, %v3141_v8 }
 0x3d5   :  { %v1339_v35 = vmul.f32 %v1326_v58, %v3107_v54 }
 0x3d6   :  { %v1290_v13 = vadd.f32 %v1282_v9, %v1234_v53 }
 0x3d8   :  { %v1346_v30 = vadd.f32 %v1338_v7, %v1290_v13  ;;  %v1758_v13 = vmul.f32 %v3268_v34, %v3032_v11 }
 0x3da   :  { %v1366_v45 = vsel %vm1365_vm13, %v1346_v30, %v3245_v0 }
 0x3dc   :  { %v1435_v3 = vpop.permute.xlu1 %1434  ;;  %v1641_v18 = vpop.permute.xlu2 %1640 }
 0x3dd   :  { %v1399_v32 = vpop.permute.xlu0 %1398  ;;  %v1450_v10 = vmul.f32 %v1435_v3, %v3032_v11  ;;  %v1653_v9 = vmul.f32 %v1641_v18, %v3107_v54 }
 0x3de   :  { %v1411_v26 = vmul.f32 %v1399_v32, %v3132_v23 }
 0x3df   :  { %v1458_v59 = vadd.f32 %v1450_v10, %v1410_v16 }
 0x3e0   :  { %v1459_v0 = vadd.f32 %v1451_v50, %v1411_v26 }
 0x3e5   :  { %v1637_v46 = vpop.permute.xlu1 %1636  ;;  %v3278_v31 = vpop.permute.xlu2 %1706 }
 0x3e6   :  { %v1652_v24 = vmul.f32 %v1637_v46, %v3052_v27  ;;  %v1593_v62 = vpop.permute.xlu0 %1592 }
 0x3e8   :  { %v1660_v61 = vadd.f32 %v1652_v24, %v1612_v12  ;;  %v1506_v12 = vadd.f32 %v1498_v60, %v1458_v59 }
 0x3ea   :  { %v3274_v22 = vsel %vm1365_vm13, %v1660_v61, %v1674_v44 }
 0x3ee   :  { %v3276_v52 = vpop.permute.xlu1 %1702  ;;  %v1275_v49 = vpop.permute.xlu2 %1274 }
 0x3ef   :  { %v1227_v39 = vpop.permute.xlu0 %1226  ;;  %v1284_v51 = vmul.f32 %v1275_v49, %v3183_v40  ;;  %v1605_v49 = vmul.f32 %v1593_v62, %v3141_v8 }
 0x3f0   :  { %v1236_v33 = vmul.f32 %v1227_v39, %v3161_v55 }
 0x3f2   :  { %v1292_v1 = vadd.f32 %v1284_v51, %v1236_v33  ;;  %v1719_v51 = vmul.f32 %v3278_v31, %v3132_v23 }
 0x3f7   :  { %v1270_v57 = vpop.permute.xlu1 %1269  ;;  %v1491_v56 = vpop.permute.xlu2 %1490 }
 0x3f8   :  { %v1443_v17 = vpop.permute.xlu0 %1442  ;;  %v1283_v42 = vmul.f32 %v1270_v57, %v3141_v8  ;;  %v1500_v28 = vmul.f32 %v1491_v56, %v3191_v14  ;;  %v1718_v56 = vmul.f32 %v3276_v52, %v3077_v41 }
 0x3f9   :  { %v1452_v25 = vmul.f32 %v1443_v17, %v3183_v40 }
 0x3fa   :  { %v1291_v48 = vadd.f32 %v1283_v42, %v1235_v43  ;;  %v1766_v41 = vadd.f32 %v1758_v13, %v1718_v56 }
 0x3fc   :  { %v1347_v6 = vadd.f32 %v1339_v35, %v1291_v48 }
 0x3fe   :  { %v1368_v63 = vsel %vm1367_vm14, %v1347_v6, %v1366_v45 }
 0x400   :  { %v1487_v19 = vpop.permute.xlu1 %1486  ;;  %v1557_v37 = vpop.permute.xlu2 %1556 }
 0x401   :  { %v1645_v44 = vpop.permute.xlu0 %1644  ;;  %v1499_v3 = vmul.f32 %v1487_v19, %v3107_v54  ;;  %v1521_v19 = vsel %vm1365_vm13, %v1506_v12, %v3254_v38  ;;  %v1566_v43 = vmul.f32 %v1557_v37, %v3161_v55 }
 0x402   :  { %v1654_v18 = vmul.f32 %v1645_v44, %v3191_v14 }
 0x403   :  { %v1507_v61 = vadd.f32 %v1499_v3, %v1459_v0 }
 0x405   :  { %v1522_v39 = vsel %vm1367_vm14, %v1507_v61, %v1521_v19 }
 0x409   :  { %v1553_v4 = vpop.permute.xlu1 %1552  ;;  %v1751_v36 = vpop.permute.xlu2 %1750 }
 0x40a   :  { %v1711_v58 = vpop.permute.xlu0 %1710  ;;  %v1565_v32 = vmul.f32 %v1553_v4, %v3132_v23 }
 0x40b   :  { %v1720_v34 = vmul.f32 %v1711_v58, %v3161_v55 }
 0x40c   :  { %v1613_v53 = vadd.f32 %v1605_v49, %v1565_v32 }
 0x40e   :  { %v1661_v48 = vadd.f32 %v1653_v9, %v1613_v53 }
 0x411   :  { %v1791_v42 = vpop.permute.xlu2 %1790 }
 0x412   :  { %v1747_v20 = vpop.permute.xlu1 %1746  ;;  %v1806_v7 = vmul.f32 %v1791_v42, %v3052_v27  ;;  %v1795_v52 = vpop.permute.xlu0 %1794 }
 0x413   :  { %v1759_v38 = vmul.f32 %v1747_v20, %v3141_v8  ;;  %v1676_v8 = vsel %vm1367_vm14, %v1661_v48, %v3274_v22  ;;  %v1760_v20 = vmul.f32 %v1751_v36, %v3183_v40  ;;  %v1807_v11 = vmul.f32 %v1795_v52, %v3107_v54 }
 0x414   :  { %v1814_v33 = vadd.f32 %v1806_v7, %v1766_v41 }
 0x415   :  { %v1767_v30 = vadd.f32 %v1759_v38, %v1719_v51  ;;  %v1768_v6 = vadd.f32 %v1760_v20, %v1720_v34 }
 0x417   :  { %v1815_v23 = vadd.f32 %v1807_v11, %v1767_v30 }
 0x41b   :  { %v1331_v21 = vpop.permute.xlu1 %1330 }
 0x41c   :  { %v1340_v47 = vmul.f32 %v1331_v21, %v3191_v14  ;;  %v1829_v21 = vsel %vm1365_vm13, %v1814_v33, %v3266_v2 }
 0x41e   :  { %v1348_v5 = vadd.f32 %v1340_v47, %v1292_v1 }
 0x420   :  { %v1370_v29 = vsel %vm1369_vm15, %v1348_v5, %v1368_v63 }
 0x421   :  { %1372 = vst [vmem:[#allocation5] sm:$0xff] %v1370_v29 }
 0x424   :  { %v1403_v46 = vpop.permute.xlu1 %1402 }
 0x425   :  { %v1412_v24 = vmul.f32 %v1403_v46, %v3161_v55 }
 0x427   :  { %v1460_v57 = vadd.f32 %v1452_v25, %v1412_v24 }
 0x429   :  { %v1508_v15 = vadd.f32 %v1500_v28, %v1460_v57 }
 0x42b   :  { %v1523_v17 = vsel %vm1369_vm15, %v1508_v15, %v1522_v39 }
 0x42c   :  { %1526 = vst [vmem:[#allocation5 + $0x8] sm:$0xff] %v1523_v17 }
 0x42d   :  { %v1597_v4 = vpop.permute.xlu1 %1596 }
 0x42e   :  { %v1606_v62 = vmul.f32 %v1597_v4, %v3183_v40  ;;  %v1830_v40 = vsel %vm1367_vm14, %v1815_v23, %v1829_v21 }
 0x430   :  { %v1614_v35 = vadd.f32 %v1606_v62, %v1566_v43 }
 0x432   :  { %v1662_v37 = vadd.f32 %v1654_v18, %v1614_v35 }
 0x434   :  { %v1677_v27 = vsel %vm1369_vm15, %v1662_v37, %v1676_v8 }
 0x435   :  { %1680 = vst [vmem:[#allocation5 + $0x10] sm:$0xff] %v1677_v27 }
 0x436   :  { %v1799_v31 = vpop.permute.xlu1 %1798 }
 0x437   :  { %v1808_v1 = vmul.f32 %v1799_v31, %v3191_v14 }
 0x439   :  { %v1816_v54 = vadd.f32 %v1808_v1, %v1768_v6 }
 0x43b   :  { %v1831_v55 = vsel %vm1369_vm15, %v1816_v54, %v1830_v40 }
 0x43c   :  { %1834 = vst [vmem:[#allocation5 + $0x18] sm:$0xff] %v1831_v55 }
 0x43d   :  { %1847 = dma.vmem_to_hbm [thread:$0]  %s1840_s14, 512, %s1842_s0, [#allocation4], %s2134_s23, %s2134_s23, %s2135_s24  }
 0x43e   :  { %2131 = dma.done.wait [#allocation4], 512  }
 0x43f   :  { %2132 = vsyncadd [#allocation4], 4294966784 }
 0x440   :  { %1852 = vsyncpa [#allocation3], 1 }
 0x441   :  { %1853 = vsyncpa [#allocation4], 1 }

</bundles_post_ra>
